<compile_context>
chip_gen: v7x
topology: tpu7x:2x2x1
jax: 0.10.0
libtpu: 0.0.40
codegen_flags: <defaults>
</compile_context>

<pallas_src>
import jax
import jax.numpy as jnp
from jax.experimental import pallas as pl
from jax.experimental.pallas import tpu as pltpu


# ------------------------------------------------------------------ fused GIE kernel

def _make_gie_kernel(H, W, CIN, COUT):
    WP = W + 8            # common padded width (halo 4: covers dil-3 reach even for the
                          #   1-px halo ring of the cat buffer)
    HC = H + 3            # cat-buffer rows: 1+H+1 domain + flat-tap over-read slack
    M1 = HC * WP          # first-stage matmul columns == entire cat buffer, flattened
    M2 = H * WP           # cat-conv matmul columns == final output (padded width)

    # Flat tap offsets into the padded input.  First-stage column j maps to cat flat
    # position j, i.e. image pixel (j//WP - 1, j%WP - 1):
    #   dilation-1, pad-1 convs (asy / norm / 1x1 res): (2+kh)*WP + (2+kw)
    #   dilation-3, pad-3 conv (dilConv):               3*kh*WP + 3*kw
    offs = ([(2 + kh) * WP + (2 + kw) for kh in range(3) for kw in range(3)] +
            [3 * kh * WP + 3 * kw for kh in range(3) for kw in range(3)])

    def kernel(x_ref, w1_ref, b1_ref, w2_ref, b2_ref, mask_ref, o_ref,
               p1_ref, cat_ref, p2_ref):
        # ---- first-stage im2col: 18 contiguous flat-offset taps of the padded input
        # x_ref is (1, CIN, HP*WP): spatial flattened, lane-dense.  Each tap is a plain
        # (CIN, M1) slice -> no windowed reshapes, no tile-crossing relayouts.
        for t, s in enumerate(offs):
            p1_ref[t * CIN:(t + 1) * CIN, :] = x_ref[0, :, s:s + M1]

        # ---- ONE matmul for [asy | dil | norm | res]  (M=4*Cout, K=18*Cin, N=M1)
        # (Default MXU precision; pass precision=jax.lax.Precision.HIGHEST for
        #  bit-closeness to torch fp32 -- the MXU has ample slack.)
        ya = jnp.dot(w1_ref[...], p1_ref[...],
                     preferred_element_type=jnp.float32) + b1_ref[...]

        # mask zeroes everything outside the valid HxW interior (the 1-px halo of the
        # cat buffer + the garbage padded-width columns), so the cat halo is rewritten
        # to zero for free every step -- no scratch zero-fill needed.
        mask = mask_ref[...]                                            # (1, M1) of {0,1}
        cat_ref[0 * COUT:1 * COUT, :] = ya[0 * COUT:1 * COUT, :] * mask                  # x1: asy (no ReLU)
        cat_ref[1 * COUT:2 * COUT, :] = jnp.maximum(ya[1 * COUT:2 * COUT, :], 0.) * mask  # x2: dil + ReLU
        cat_ref[2 * COUT:3 * COUT, :] = jnp.maximum(ya[2 * COUT:3 * COUT, :], 0.) * mask  # x3: norm + ReLU
        # 1x1 residual branch, re-aligned from cat coordinates to output coordinates
        x_res = ya[3 * COUT:4 * COUT, WP + 1:WP + 1 + M2]

        # ---- cat-conv im2col: 9 contiguous flat-offset taps of the cat buffer
        for kh in range(3):
            for kw in range(3):
                t = kh * 3 + kw
                p2_ref[t * 3 * COUT:(t + 1) * 3 * COUT, :] = \
                    cat_ref[:, kh * WP + kw:kh * WP + kw + M2]

        x_cat = jnp.maximum(
            jnp.dot(w2_ref[...], p2_ref[...],
                    preferred_element_type=jnp.float32) + b2_ref[...], 0.)

        # ---- residual add + GELU (tanh form -> EUP slot, free alongside VPU work)
        # TODO(synk): torch.nn.GELU() default is exact erf; erf has no guaranteed Mosaic
        # lowering, so the tanh approximation (max abs err ~1e-3) is used here.
        v = x_cat + x_res
        out = 0.5 * v * (1.0 + jnp.tanh(0.7978845608028654 * (v + 0.044715 * v * v * v)))
        o_ref[0, :, :] = out                                            # (Cout, H*WP)

    return kernel


# ------------------------------------------------------------------ wrapper helpers

def _fold_bn(w, bn, eps=1e-5):
    """Fold inference-mode BatchNorm into conv weight/bias. w: (Cout, Cin, KH, KW)."""
    gamma, beta, mean, var = bn
    scale = gamma / jnp.sqrt(var + eps)
    return w * scale[:, None, None, None], beta - mean * scale


def _rows(w):
    """(Cout, Cin, KH, KW) -> (Cout, KH*KW*Cin); K index = (kh, kw, cin), matching the
    kernel's tap-major / channel-minor im2col row order."""
    co, ci, kh, kw = w.shape
    return jnp.transpose(w, (0, 2, 3, 1)).reshape(co, kh * kw * ci).astype(jnp.float32)


def gie_forward(x_nchw, p):
    B, Cin, H, W = x_nchw.shape
    Cout = p['norm_w'].shape[0]
    WP, HC = W + 8, H + 3
    M1, M2 = HC * WP, H * WP
    HP = -(-(6 * WP + 6 + M1) // WP)         # padded rows needed by the flat-offset taps

    # ---- fold BN; reparameterize asyConv (3x3 + 3x1 + 1x3, each with BN) into ONE 3x3
    w_sq, b_sq = _fold_bn(p['asy_square_w'], p['asy_square_bn'])
    w_v, b_v = _fold_bn(p['asy_ver_w'], p['asy_ver_bn'])                # (Co, Ci, 3, 1)
    w_h, b_h = _fold_bn(p['asy_hor_w'], p['asy_hor_bn'])                # (Co, Ci, 1, 3)
    w_asy = (w_sq
             + jnp.pad(w_v, ((0, 0), (0, 0), (0, 0), (1, 1)))           # middle column
             + jnp.pad(w_h, ((0, 0), (0, 0), (1, 1), (0, 0))))          # middle row
    b_asy = b_sq + b_v + b_h
    w_dil, b_dil = _fold_bn(p['dil_w'], p['dil_bn'])
    w_nrm, b_nrm = _fold_bn(p['norm_w'], p['norm_bn'])
    w_res, b_res = _fold_bn(p['res_w'], p['res_bn'])                    # (Co, Ci, 1, 1)
    w_res3 = jnp.pad(w_res, ((0, 0), (0, 0), (1, 1), (1, 1)))           # -> center tap
    w_cat, b_cat = _fold_bn(p['cat_w'], p['cat_bn'])

    # ---- merged first-stage weight: rows = [asy | dil | norm | res], block-diagonal K:
    # first 9*Cin columns = dilation-1 taps, last 9*Cin = dilation-3 taps.
    z = jnp.zeros((Cout, 9 * Cin), jnp.float32)
    w1 = jnp.concatenate([
        jnp.concatenate([_rows(w_asy), z], 1),
        jnp.concatenate([z, _rows(w_dil)], 1),
        jnp.concatenate([_rows(w_nrm), z], 1),
        jnp.concatenate([_rows(w_res3), z], 1)], 0)
    b1 = jnp.concatenate([b_asy, b_dil, b_nrm, b_res]).reshape(4 * Cout, 1).astype(jnp.float32)
    w2 = _rows(w_cat)                                                   # (Cout, 27*Cout)
    b2 = b_cat.reshape(Cout, 1).astype(jnp.float32)

    # ---- validity mask over the cat / first-stage domain (zeroes halo + pad columns)
    r, c = jnp.arange(HC), jnp.arange(WP)
    mask = (((r >= 1) & (r <= H))[:, None] & ((c >= 1) & (c <= W))[None, :])
    mask = mask.astype(jnp.float32).reshape(1, M1)

    # ---- pad input once (halo 4 + flat-tap over-read slack), flatten spatially so the
    # spatial axis is the lane dimension everywhere inside the kernel.
    xp = jnp.pad(x_nchw.astype(jnp.float32),
                 ((0, 0), (0, 0), (4, HP - H - 4), (4, WP - W - 4))
                 ).reshape(B, Cin, HP * WP)

    kernel = _make_gie_kernel(H, W, Cin, Cout)
    out = pl.pallas_call(
        kernel,
        out_shape=jax.ShapeDtypeStruct((B, Cout, M2), jnp.float32),
        grid=(B,),
        in_specs=[
            pl.BlockSpec((1, Cin, HP * WP), lambda b: (b, 0, 0)),       # padded input
            pl.BlockSpec((4 * Cout, 18 * Cin), lambda b: (0, 0)),       # merged stage-1 W
            pl.BlockSpec((4 * Cout, 1), lambda b: (0, 0)),              # merged stage-1 b
            pl.BlockSpec((Cout, 27 * Cout), lambda b: (0, 0)),          # cat-conv W
            pl.BlockSpec((Cout, 1), lambda b: (0, 0)),                  # cat-conv b
            pl.BlockSpec((1, M1), lambda b: (0, 0)),                    # interior mask
        ],
        out_specs=pl.BlockSpec((1, Cout, M2), lambda b: (b, 0, 0)),
        scratch_shapes=[
            pltpu.VMEM((18 * Cin, M1), jnp.float32),    # stage-1 im2col patches
            pltpu.VMEM((3 * Cout, M1), jnp.float32),    # concat(x1,x2,x3) + zero halo
            pltpu.VMEM((27 * Cout, M2), jnp.float32),   # cat-conv im2col patches
        ],
        # TODO(synk): v5e/v6e (single TC): fold B into M with grid=() to kill per-step
        # overhead; v7x: keep a >=2-way parallel axis (batch here, or H-tiles for B=1).
        compiler_params=pltpu.CompilerParams(dimension_semantics=("parallel",)),
    )(xp, w1, b1, w2, b2, mask)

    # Kernel output is already NCHW over the padded width (lane-dense stores);
    # one cheap slice drops the pad columns.  No transposes anywhere.
    return out.reshape(B, Cout, H, WP)[:, :, :, :W]


# ------------------------------------------------------------------ parameters

def init_params(key, cin, cout):
    ks = jax.random.split(key, 14)

    def conv_w(k, co, ci, kh, kw):
        return jax.random.normal(k, (co, ci, kh, kw), jnp.float32) * 0.1

    def bn(k, c):
        k1, k2, k3, k4 = jax.random.split(k, 4)
        gamma = 1.0 + 0.1 * jax.random.normal(k1, (c,), jnp.float32)
        beta = 0.1 * jax.random.normal(k2, (c,), jnp.float32)
        mean = 0.1 * jax.random.normal(k3, (c,), jnp.float32)
        var = 1.0 + 0.1 * jax.random.uniform(k4, (c,), jnp.float32)
        return gamma, beta, mean, var

    return {
        'asy_square_w': conv_w(ks[0], cout, cin, 3, 3), 'asy_square_bn': bn(ks[1], cout),
        'asy_ver_w':    conv_w(ks[2], cout, cin, 3, 1), 'asy_ver_bn':    bn(ks[3], cout),
        'asy_hor_w':    conv_w(ks[4], cout, cin, 1, 3), 'asy_hor_bn':    bn(ks[5], cout),
        'dil_w':        conv_w(ks[6], cout, cin, 3, 3), 'dil_bn':        bn(ks[7], cout),
        'norm_w':       conv_w(ks[8], cout, cin, 3, 3), 'norm_bn':       bn(ks[9], cout),
        'cat_w':        conv_w(ks[10], cout, 3 * cout, 3, 3), 'cat_bn':  bn(ks[11], cout),
        'res_w':        conv_w(ks[12], cout, cin, 1, 1), 'res_bn':       bn(ks[13], cout),
    }


# --------------------------------------------------------------------- main

if __name__ == "__main__":
    key = jax.random.PRNGKey(0)
    k_x, k_p = jax.random.split(key)

    B, Cin, Cout, H, W = 2, 4, 8, 16, 16
    x = jax.random.normal(k_x, (B, Cin, H, W), jnp.float32)
    params = init_params(k_p, Cin, Cout)

    out = jax.jit(gie_forward)(x, params)
    out = jax.block_until_ready(out)
    assert out.shape == (B, Cout, H, W)
    assert jnp.all(jnp.isfinite(out))
    print("KERNEL_OK")
</pallas_src>

<mosaic_0001>
module attributes {stable_mosaic.version = 11 : i64} {
  func.func @kernel(%arg0: i32, %arg1: memref<1x4x624xf32, #tpu.memory_space<vmem>>, %arg2: memref<32x72xf32, #tpu.memory_space<vmem>>, %arg3: memref<32x1xf32, #tpu.memory_space<vmem>>, %arg4: memref<8x216xf32, #tpu.memory_space<vmem>>, %arg5: memref<8x1xf32, #tpu.memory_space<vmem>>, %arg6: memref<1x456xf32, #tpu.memory_space<vmem>>, %arg7: memref<1x8x384xf32, #tpu.memory_space<vmem>>, %arg8: memref<72x456xf32, #tpu.memory_space<vmem>>, %arg9: memref<24x456xf32, #tpu.memory_space<vmem>>, %arg10: memref<216x384xf32, #tpu.memory_space<vmem>>) attributes {dimension_semantics = [#tpu.dimension_semantics<parallel>], iteration_bounds = array<i64: 2>, scalar_prefetch = 0 : i64, scratch_operands = 3 : i64, tpu.core_type = #tpu.core_type<tc>, window_params = [{transform_indices = @transform_0, window_bounds = array<i64: 1, 4, 624>}, {pipeline_mode = #tpu.pipeline_mode<synchronous>, transform_indices = @transform_1, window_bounds = array<i64: 32, 72>}, {pipeline_mode = #tpu.pipeline_mode<synchronous>, transform_indices = @transform_2, window_bounds = array<i64: 32, 1>}, {pipeline_mode = #tpu.pipeline_mode<synchronous>, transform_indices = @transform_3, window_bounds = array<i64: 8, 216>}, {pipeline_mode = #tpu.pipeline_mode<synchronous>, transform_indices = @transform_4, window_bounds = array<i64: 8, 1>}, {pipeline_mode = #tpu.pipeline_mode<synchronous>, transform_indices = @transform_5, window_bounds = array<i64: 1, 456>}, {transform_indices = @transform_6, window_bounds = array<i64: 1, 8, 384>}]} {
    %c0 = arith.constant 0 : index
    %c0_0 = arith.constant 0 : index
    %c50 = arith.constant 50 : index
    %0 = vector.load %arg1[%c0, %c0_0, %c50] : memref<1x4x624xf32, #tpu.memory_space<vmem>>, vector<1x4x456xf32>
    %1 = vector.shape_cast %0 : vector<1x4x456xf32> to vector<4x456xf32>
    %c0_1 = arith.constant 0 : index
    %c0_2 = arith.constant 0 : index
    %2 = vector.load %arg8[%c0_1, %c0_2] : memref<72x456xf32, #tpu.memory_space<vmem>>, vector<4x456xf32>
    tpu.vector_store %arg8[%c0_1, %c0_2], %1 {strides = array<i32>} : memref<72x456xf32, #tpu.memory_space<vmem>>, vector<4x456xf32>,
    %c0_3 = arith.constant 0 : index
    %c0_4 = arith.constant 0 : index
    %c51 = arith.constant 51 : index
    %3 = vector.load %arg1[%c0_3, %c0_4, %c51] : memref<1x4x624xf32, #tpu.memory_space<vmem>>, vector<1x4x456xf32>
    %4 = vector.shape_cast %3 : vector<1x4x456xf32> to vector<4x456xf32>
    %c4 = arith.constant 4 : index
    %c0_5 = arith.constant 0 : index
    %5 = vector.load %arg8[%c4, %c0_5] : memref<72x456xf32, #tpu.memory_space<vmem>>, vector<4x456xf32>
    tpu.vector_store %arg8[%c4, %c0_5], %4 {strides = array<i32>} : memref<72x456xf32, #tpu.memory_space<vmem>>, vector<4x456xf32>,
    %c0_6 = arith.constant 0 : index
    %c0_7 = arith.constant 0 : index
    %c52 = arith.constant 52 : index
    %6 = vector.load %arg1[%c0_6, %c0_7, %c52] : memref<1x4x624xf32, #tpu.memory_space<vmem>>, vector<1x4x456xf32>
    %7 = vector.shape_cast %6 : vector<1x4x456xf32> to vector<4x456xf32>
    %c8 = arith.constant 8 : index
    %c0_8 = arith.constant 0 : index
    %8 = vector.load %arg8[%c8, %c0_8] : memref<72x456xf32, #tpu.memory_space<vmem>>, vector<4x456xf32>
    tpu.vector_store %arg8[%c8, %c0_8], %7 {strides = array<i32>} : memref<72x456xf32, #tpu.memory_space<vmem>>, vector<4x456xf32>,
    %c0_9 = arith.constant 0 : index
    %c0_10 = arith.constant 0 : index
    %c74 = arith.constant 74 : index
    %9 = vector.load %arg1[%c0_9, %c0_10, %c74] : memref<1x4x624xf32, #tpu.memory_space<vmem>>, vector<1x4x456xf32>
    %10 = vector.shape_cast %9 : vector<1x4x456xf32> to vector<4x456xf32>
    %c12 = arith.constant 12 : index
    %c0_11 = arith.constant 0 : index
    %11 = vector.load %arg8[%c12, %c0_11] : memref<72x456xf32, #tpu.memory_space<vmem>>, vector<4x456xf32>
    tpu.vector_store %arg8[%c12, %c0_11], %10 {strides = array<i32>} : memref<72x456xf32, #tpu.memory_space<vmem>>, vector<4x456xf32>,
    %c0_12 = arith.constant 0 : index
    %c0_13 = arith.constant 0 : index
    %c75 = arith.constant 75 : index
    %12 = vector.load %arg1[%c0_12, %c0_13, %c75] : memref<1x4x624xf32, #tpu.memory_space<vmem>>, vector<1x4x456xf32>
    %13 = vector.shape_cast %12 : vector<1x4x456xf32> to vector<4x456xf32>
    %c16 = arith.constant 16 : index
    %c0_14 = arith.constant 0 : index
    %14 = vector.load %arg8[%c16, %c0_14] : memref<72x456xf32, #tpu.memory_space<vmem>>, vector<4x456xf32>
    tpu.vector_store %arg8[%c16, %c0_14], %13 {strides = array<i32>} : memref<72x456xf32, #tpu.memory_space<vmem>>, vector<4x456xf32>,
    %c0_15 = arith.constant 0 : index
    %c0_16 = arith.constant 0 : index
    %c76 = arith.constant 76 : index
    %15 = vector.load %arg1[%c0_15, %c0_16, %c76] : memref<1x4x624xf32, #tpu.memory_space<vmem>>, vector<1x4x456xf32>
    %16 = vector.shape_cast %15 : vector<1x4x456xf32> to vector<4x456xf32>
    %c20 = arith.constant 20 : index
    %c0_17 = arith.constant 0 : index
    %17 = vector.load %arg8[%c20, %c0_17] : memref<72x456xf32, #tpu.memory_space<vmem>>, vector<4x456xf32>
    tpu.vector_store %arg8[%c20, %c0_17], %16 {strides = array<i32>} : memref<72x456xf32, #tpu.memory_space<vmem>>, vector<4x456xf32>,
    %c0_18 = arith.constant 0 : index
    %c0_19 = arith.constant 0 : index
    %c98 = arith.constant 98 : index
    %18 = vector.load %arg1[%c0_18, %c0_19, %c98] : memref<1x4x624xf32, #tpu.memory_space<vmem>>, vector<1x4x456xf32>
    %19 = vector.shape_cast %18 : vector<1x4x456xf32> to vector<4x456xf32>
    %c24 = arith.constant 24 : index
    %c0_20 = arith.constant 0 : index
    %20 = vector.load %arg8[%c24, %c0_20] : memref<72x456xf32, #tpu.memory_space<vmem>>, vector<4x456xf32>
    tpu.vector_store %arg8[%c24, %c0_20], %19 {strides = array<i32>} : memref<72x456xf32, #tpu.memory_space<vmem>>, vector<4x456xf32>,
    %c0_21 = arith.constant 0 : index
    %c0_22 = arith.constant 0 : index
    %c99 = arith.constant 99 : index
    %21 = vector.load %arg1[%c0_21, %c0_22, %c99] : memref<1x4x624xf32, #tpu.memory_space<vmem>>, vector<1x4x456xf32>
    %22 = vector.shape_cast %21 : vector<1x4x456xf32> to vector<4x456xf32>
    %c28 = arith.constant 28 : index
    %c0_23 = arith.constant 0 : index
    %23 = vector.load %arg8[%c28, %c0_23] : memref<72x456xf32, #tpu.memory_space<vmem>>, vector<4x456xf32>
    tpu.vector_store %arg8[%c28, %c0_23], %22 {strides = array<i32>} : memref<72x456xf32, #tpu.memory_space<vmem>>, vector<4x456xf32>,
    %c0_24 = arith.constant 0 : index
    %c0_25 = arith.constant 0 : index
    %c100 = arith.constant 100 : index
    %24 = vector.load %arg1[%c0_24, %c0_25, %c100] : memref<1x4x624xf32, #tpu.memory_space<vmem>>, vector<1x4x456xf32>
    %25 = vector.shape_cast %24 : vector<1x4x456xf32> to vector<4x456xf32>
    %c32 = arith.constant 32 : index
    %c0_26 = arith.constant 0 : index
    %26 = vector.load %arg8[%c32, %c0_26] : memref<72x456xf32, #tpu.memory_space<vmem>>, vector<4x456xf32>
    tpu.vector_store %arg8[%c32, %c0_26], %25 {strides = array<i32>} : memref<72x456xf32, #tpu.memory_space<vmem>>, vector<4x456xf32>,
    %c0_27 = arith.constant 0 : index
    %c0_28 = arith.constant 0 : index
    %c0_29 = arith.constant 0 : index
    %27 = vector.load %arg1[%c0_27, %c0_28, %c0_29] : memref<1x4x624xf32, #tpu.memory_space<vmem>>, vector<1x4x456xf32>
    %28 = vector.shape_cast %27 : vector<1x4x456xf32> to vector<4x456xf32>
    %c36 = arith.constant 36 : index
    %c0_30 = arith.constant 0 : index
    %29 = vector.load %arg8[%c36, %c0_30] : memref<72x456xf32, #tpu.memory_space<vmem>>, vector<4x456xf32>
    tpu.vector_store %arg8[%c36, %c0_30], %28 {strides = array<i32>} : memref<72x456xf32, #tpu.memory_space<vmem>>, vector<4x456xf32>,
    %c0_31 = arith.constant 0 : index
    %c0_32 = arith.constant 0 : index
    %c3 = arith.constant 3 : index
    %30 = vector.load %arg1[%c0_31, %c0_32, %c3] : memref<1x4x624xf32, #tpu.memory_space<vmem>>, vector<1x4x456xf32>
    %31 = vector.shape_cast %30 : vector<1x4x456xf32> to vector<4x456xf32>
    %c40 = arith.constant 40 : index
    %c0_33 = arith.constant 0 : index
    %32 = vector.load %arg8[%c40, %c0_33] : memref<72x456xf32, #tpu.memory_space<vmem>>, vector<4x456xf32>
    tpu.vector_store %arg8[%c40, %c0_33], %31 {strides = array<i32>} : memref<72x456xf32, #tpu.memory_space<vmem>>, vector<4x456xf32>,
    %c0_34 = arith.constant 0 : index
    %c0_35 = arith.constant 0 : index
    %c6 = arith.constant 6 : index
    %33 = vector.load %arg1[%c0_34, %c0_35, %c6] : memref<1x4x624xf32, #tpu.memory_space<vmem>>, vector<1x4x456xf32>
    %34 = vector.shape_cast %33 : vector<1x4x456xf32> to vector<4x456xf32>
    %c44 = arith.constant 44 : index
    %c0_36 = arith.constant 0 : index
    %35 = vector.load %arg8[%c44, %c0_36] : memref<72x456xf32, #tpu.memory_space<vmem>>, vector<4x456xf32>
    tpu.vector_store %arg8[%c44, %c0_36], %34 {strides = array<i32>} : memref<72x456xf32, #tpu.memory_space<vmem>>, vector<4x456xf32>,
    %c0_37 = arith.constant 0 : index
    %c0_38 = arith.constant 0 : index
    %c72 = arith.constant 72 : index
    %36 = vector.load %arg1[%c0_37, %c0_38, %c72] : memref<1x4x624xf32, #tpu.memory_space<vmem>>, vector<1x4x456xf32>
    %37 = vector.shape_cast %36 : vector<1x4x456xf32> to vector<4x456xf32>
    %c48 = arith.constant 48 : index
    %c0_39 = arith.constant 0 : index
    %38 = vector.load %arg8[%c48, %c0_39] : memref<72x456xf32, #tpu.memory_space<vmem>>, vector<4x456xf32>
    tpu.vector_store %arg8[%c48, %c0_39], %37 {strides = array<i32>} : memref<72x456xf32, #tpu.memory_space<vmem>>, vector<4x456xf32>,
    %c0_40 = arith.constant 0 : index
    %c0_41 = arith.constant 0 : index
    %c75_42 = arith.constant 75 : index
    %39 = vector.load %arg1[%c0_40, %c0_41, %c75_42] : memref<1x4x624xf32, #tpu.memory_space<vmem>>, vector<1x4x456xf32>
    %40 = vector.shape_cast %39 : vector<1x4x456xf32> to vector<4x456xf32>
    %c52_43 = arith.constant 52 : index
    %c0_44 = arith.constant 0 : index
    %41 = vector.load %arg8[%c52_43, %c0_44] : memref<72x456xf32, #tpu.memory_space<vmem>>, vector<4x456xf32>
    tpu.vector_store %arg8[%c52_43, %c0_44], %40 {strides = array<i32>} : memref<72x456xf32, #tpu.memory_space<vmem>>, vector<4x456xf32>,
    %c0_45 = arith.constant 0 : index
    %c0_46 = arith.constant 0 : index
    %c78 = arith.constant 78 : index
    %42 = vector.load %arg1[%c0_45, %c0_46, %c78] : memref<1x4x624xf32, #tpu.memory_space<vmem>>, vector<1x4x456xf32>
    %43 = vector.shape_cast %42 : vector<1x4x456xf32> to vector<4x456xf32>
    %c56 = arith.constant 56 : index
    %c0_47 = arith.constant 0 : index
    %44 = vector.load %arg8[%c56, %c0_47] : memref<72x456xf32, #tpu.memory_space<vmem>>, vector<4x456xf32>
    tpu.vector_store %arg8[%c56, %c0_47], %43 {strides = array<i32>} : memref<72x456xf32, #tpu.memory_space<vmem>>, vector<4x456xf32>,
    %c0_48 = arith.constant 0 : index
    %c0_49 = arith.constant 0 : index
    %c144 = arith.constant 144 : index
    %45 = vector.load %arg1[%c0_48, %c0_49, %c144] : memref<1x4x624xf32, #tpu.memory_space<vmem>>, vector<1x4x456xf32>
    %46 = vector.shape_cast %45 : vector<1x4x456xf32> to vector<4x456xf32>
    %c60 = arith.constant 60 : index
    %c0_50 = arith.constant 0 : index
    %47 = vector.load %arg8[%c60, %c0_50] : memref<72x456xf32, #tpu.memory_space<vmem>>, vector<4x456xf32>
    tpu.vector_store %arg8[%c60, %c0_50], %46 {strides = array<i32>} : memref<72x456xf32, #tpu.memory_space<vmem>>, vector<4x456xf32>,
    %c0_51 = arith.constant 0 : index
    %c0_52 = arith.constant 0 : index
    %c147 = arith.constant 147 : index
    %48 = vector.load %arg1[%c0_51, %c0_52, %c147] : memref<1x4x624xf32, #tpu.memory_space<vmem>>, vector<1x4x456xf32>
    %49 = vector.shape_cast %48 : vector<1x4x456xf32> to vector<4x456xf32>
    %c64 = arith.constant 64 : index
    %c0_53 = arith.constant 0 : index
    %50 = vector.load %arg8[%c64, %c0_53] : memref<72x456xf32, #tpu.memory_space<vmem>>, vector<4x456xf32>
    tpu.vector_store %arg8[%c64, %c0_53], %49 {strides = array<i32>} : memref<72x456xf32, #tpu.memory_space<vmem>>, vector<4x456xf32>,
    %c0_54 = arith.constant 0 : index
    %c0_55 = arith.constant 0 : index
    %c150 = arith.constant 150 : index
    %51 = vector.load %arg1[%c0_54, %c0_55, %c150] : memref<1x4x624xf32, #tpu.memory_space<vmem>>, vector<1x4x456xf32>
    %52 = vector.shape_cast %51 : vector<1x4x456xf32> to vector<4x456xf32>
    %c68 = arith.constant 68 : index
    %c0_56 = arith.constant 0 : index
    %53 = vector.load %arg8[%c68, %c0_56] : memref<72x456xf32, #tpu.memory_space<vmem>>, vector<4x456xf32>
    tpu.vector_store %arg8[%c68, %c0_56], %52 {strides = array<i32>} : memref<72x456xf32, #tpu.memory_space<vmem>>, vector<4x456xf32>,
    %c0_57 = arith.constant 0 : index
    %c0_58 = arith.constant 0 : index
    %54 = vector.load %arg2[%c0_57, %c0_58] : memref<32x72xf32, #tpu.memory_space<vmem>>, vector<32x72xf32>
    %c0_59 = arith.constant 0 : index
    %c0_60 = arith.constant 0 : index
    %55 = vector.load %arg8[%c0_59, %c0_60] : memref<72x456xf32, #tpu.memory_space<vmem>>, vector<72x456xf32>
    %cst = arith.constant dense<0.000000e+00> : vector<32x456xf32>
    %56 = tpu.matmul %54, %55, %cst {dimension_numbers = #tpu.dot_dimension_numbers<[1], [0], [0], [1], [0, 0, 1, 1], [], []>} : vector<32x72xf32>, vector<72x456xf32>, vector<32x456xf32> -> vector<32x456xf32>
    %c0_61 = arith.constant 0 : index
    %c0_62 = arith.constant 0 : index
    %57 = vector.load %arg3[%c0_61, %c0_62] : memref<32x1xf32, #tpu.memory_space<vmem>>, vector<32x1xf32>
    %58 = vector.broadcast %57 : vector<32x1xf32> to vector<32x456xf32>
    %59 = arith.addf %56, %58 : vector<32x456xf32>
    %c0_63 = arith.constant 0 : index
    %c0_64 = arith.constant 0 : index
    %60 = vector.load %arg6[%c0_63, %c0_64] : memref<1x456xf32, #tpu.memory_space<vmem>>, vector<1x456xf32>
    %61 = vector.extract_strided_slice %59 {offsets = [0, 0], sizes = [8, 456], strides = [1, 1]} : vector<32x456xf32> to vector<8x456xf32>
    %62 = vector.broadcast %60 : vector<1x456xf32> to vector<8x456xf32>
    %63 = arith.mulf %61, %62 : vector<8x456xf32>
    %c0_65 = arith.constant 0 : index
    %c0_66 = arith.constant 0 : index
    %64 = vector.load %arg9[%c0_65, %c0_66] : memref<24x456xf32, #tpu.memory_space<vmem>>, vector<8x456xf32>
    tpu.vector_store %arg9[%c0_65, %c0_66], %63 {strides = array<i32>} : memref<24x456xf32, #tpu.memory_space<vmem>>, vector<8x456xf32>,
    %65 = vector.extract_strided_slice %59 {offsets = [8, 0], sizes = [8, 456], strides = [1, 1]} : vector<32x456xf32> to vector<8x456xf32>
    %cst_67 = arith.constant 0.000000e+00 : f32
    %66 = vector.broadcast %cst_67 : f32 to vector<8x456xf32>
    %67 = arith.maximumf %65, %66 : vector<8x456xf32>
    %68 = vector.broadcast %60 : vector<1x456xf32> to vector<8x456xf32>
    %69 = arith.mulf %67, %68 : vector<8x456xf32>
    %c8_68 = arith.constant 8 : index
    %c0_69 = arith.constant 0 : index
    %70 = vector.load %arg9[%c8_68, %c0_69] : memref<24x456xf32, #tpu.memory_space<vmem>>, vector<8x456xf32>
    tpu.vector_store %arg9[%c8_68, %c0_69], %69 {strides = array<i32>} : memref<24x456xf32, #tpu.memory_space<vmem>>, vector<8x456xf32>,
    %71 = vector.extract_strided_slice %59 {offsets = [16, 0], sizes = [8, 456], strides = [1, 1]} : vector<32x456xf32> to vector<8x456xf32>
    %cst_70 = arith.constant 0.000000e+00 : f32
    %72 = vector.broadcast %cst_70 : f32 to vector<8x456xf32>
    %73 = arith.maximumf %71, %72 : vector<8x456xf32>
    %74 = vector.broadcast %60 : vector<1x456xf32> to vector<8x456xf32>
    %75 = arith.mulf %73, %74 : vector<8x456xf32>
    %c16_71 = arith.constant 16 : index
    %c0_72 = arith.constant 0 : index
    %76 = vector.load %arg9[%c16_71, %c0_72] : memref<24x456xf32, #tpu.memory_space<vmem>>, vector<8x456xf32>
    tpu.vector_store %arg9[%c16_71, %c0_72], %75 {strides = array<i32>} : memref<24x456xf32, #tpu.memory_space<vmem>>, vector<8x456xf32>,
    %77 = vector.extract_strided_slice %59 {offsets = [24, 25], sizes = [8, 384], strides = [1, 1]} : vector<32x456xf32> to vector<8x384xf32>
    %c0_73 = arith.constant 0 : index
    %c0_74 = arith.constant 0 : index
    %78 = vector.load %arg9[%c0_73, %c0_74] : memref<24x456xf32, #tpu.memory_space<vmem>>, vector<24x384xf32>
    %c0_75 = arith.constant 0 : index
    %c0_76 = arith.constant 0 : index
    %79 = vector.load %arg10[%c0_75, %c0_76] : memref<216x384xf32, #tpu.memory_space<vmem>>, vector<24x384xf32>
    tpu.vector_store %arg10[%c0_75, %c0_76], %78 {strides = array<i32>} : memref<216x384xf32, #tpu.memory_space<vmem>>, vector<24x384xf32>,
    %c0_77 = arith.constant 0 : index
    %c1 = arith.constant 1 : index
    %80 = vector.load %arg9[%c0_77, %c1] : memref<24x456xf32, #tpu.memory_space<vmem>>, vector<24x384xf32>
    %c24_78 = arith.constant 24 : index
    %c0_79 = arith.constant 0 : index
    %81 = vector.load %arg10[%c24_78, %c0_79] : memref<216x384xf32, #tpu.memory_space<vmem>>, vector<24x384xf32>
    tpu.vector_store %arg10[%c24_78, %c0_79], %80 {strides = array<i32>} : memref<216x384xf32, #tpu.memory_space<vmem>>, vector<24x384xf32>,
    %c0_80 = arith.constant 0 : index
    %c2 = arith.constant 2 : index
    %82 = vector.load %arg9[%c0_80, %c2] : memref<24x456xf32, #tpu.memory_space<vmem>>, vector<24x384xf32>
    %c48_81 = arith.constant 48 : index
    %c0_82 = arith.constant 0 : index
    %83 = vector.load %arg10[%c48_81, %c0_82] : memref<216x384xf32, #tpu.memory_space<vmem>>, vector<24x384xf32>
    tpu.vector_store %arg10[%c48_81, %c0_82], %82 {strides = array<i32>} : memref<216x384xf32, #tpu.memory_space<vmem>>, vector<24x384xf32>,
    %c0_83 = arith.constant 0 : index
    %c24_84 = arith.constant 24 : index
    %84 = vector.load %arg9[%c0_83, %c24_84] : memref<24x456xf32, #tpu.memory_space<vmem>>, vector<24x384xf32>
    %c72_85 = arith.constant 72 : index
    %c0_86 = arith.constant 0 : index
    %85 = vector.load %arg10[%c72_85, %c0_86] : memref<216x384xf32, #tpu.memory_space<vmem>>, vector<24x384xf32>
    tpu.vector_store %arg10[%c72_85, %c0_86], %84 {strides = array<i32>} : memref<216x384xf32, #tpu.memory_space<vmem>>, vector<24x384xf32>,
    %c0_87 = arith.constant 0 : index
    %c25 = arith.constant 25 : index
    %86 = vector.load %arg9[%c0_87, %c25] : memref<24x456xf32, #tpu.memory_space<vmem>>, vector<24x384xf32>
    %c96 = arith.constant 96 : index
    %c0_88 = arith.constant 0 : index
    %87 = vector.load %arg10[%c96, %c0_88] : memref<216x384xf32, #tpu.memory_space<vmem>>, vector<24x384xf32>
    tpu.vector_store %arg10[%c96, %c0_88], %86 {strides = array<i32>} : memref<216x384xf32, #tpu.memory_space<vmem>>, vector<24x384xf32>,
    %c0_89 = arith.constant 0 : index
    %c26 = arith.constant 26 : index
    %88 = vector.load %arg9[%c0_89, %c26] : memref<24x456xf32, #tpu.memory_space<vmem>>, vector<24x384xf32>
    %c120 = arith.constant 120 : index
    %c0_90 = arith.constant 0 : index
    %89 = vector.load %arg10[%c120, %c0_90] : memref<216x384xf32, #tpu.memory_space<vmem>>, vector<24x384xf32>
    tpu.vector_store %arg10[%c120, %c0_90], %88 {strides = array<i32>} : memref<216x384xf32, #tpu.memory_space<vmem>>, vector<24x384xf32>,
    %c0_91 = arith.constant 0 : index
    %c48_92 = arith.constant 48 : index
    %90 = vector.load %arg9[%c0_91, %c48_92] : memref<24x456xf32, #tpu.memory_space<vmem>>, vector<24x384xf32>
    %c144_93 = arith.constant 144 : index
    %c0_94 = arith.constant 0 : index
    %91 = vector.load %arg10[%c144_93, %c0_94] : memref<216x384xf32, #tpu.memory_space<vmem>>, vector<24x384xf32>
    tpu.vector_store %arg10[%c144_93, %c0_94], %90 {strides = array<i32>} : memref<216x384xf32, #tpu.memory_space<vmem>>, vector<24x384xf32>,
    %c0_95 = arith.constant 0 : index
    %c49 = arith.constant 49 : index
    %92 = vector.load %arg9[%c0_95, %c49] : memref<24x456xf32, #tpu.memory_space<vmem>>, vector<24x384xf32>
    %c168 = arith.constant 168 : index
    %c0_96 = arith.constant 0 : index
    %93 = vector.load %arg10[%c168, %c0_96] : memref<216x384xf32, #tpu.memory_space<vmem>>, vector<24x384xf32>
    tpu.vector_store %arg10[%c168, %c0_96], %92 {strides = array<i32>} : memref<216x384xf32, #tpu.memory_space<vmem>>, vector<24x384xf32>,
    %c0_97 = arith.constant 0 : index
    %c50_98 = arith.constant 50 : index
    %94 = vector.load %arg9[%c0_97, %c50_98] : memref<24x456xf32, #tpu.memory_space<vmem>>, vector<24x384xf32>
    %c192 = arith.constant 192 : index
    %c0_99 = arith.constant 0 : index
    %95 = vector.load %arg10[%c192, %c0_99] : memref<216x384xf32, #tpu.memory_space<vmem>>, vector<24x384xf32>
    tpu.vector_store %arg10[%c192, %c0_99], %94 {strides = array<i32>} : memref<216x384xf32, #tpu.memory_space<vmem>>, vector<24x384xf32>,
    %c0_100 = arith.constant 0 : index
    %c0_101 = arith.constant 0 : index
    %96 = vector.load %arg4[%c0_100, %c0_101] : memref<8x216xf32, #tpu.memory_space<vmem>>, vector<8x216xf32>
    %c0_102 = arith.constant 0 : index
    %c0_103 = arith.constant 0 : index
    %97 = vector.load %arg10[%c0_102, %c0_103] : memref<216x384xf32, #tpu.memory_space<vmem>>, vector<216x384xf32>
    %cst_104 = arith.constant dense<0.000000e+00> : vector<8x384xf32>
    %98 = tpu.matmul %96, %97, %cst_104 {dimension_numbers = #tpu.dot_dimension_numbers<[1], [0], [0], [1], [0, 0, 1, 1], [], []>} : vector<8x216xf32>, vector<216x384xf32>, vector<8x384xf32> -> vector<8x384xf32>
    %c0_105 = arith.constant 0 : index
    %c0_106 = arith.constant 0 : index
    %99 = vector.load %arg5[%c0_105, %c0_106] : memref<8x1xf32, #tpu.memory_space<vmem>>, vector<8x1xf32>
    %100 = vector.broadcast %99 : vector<8x1xf32> to vector<8x384xf32>
    %101 = arith.addf %98, %100 : vector<8x384xf32>
    %cst_107 = arith.constant 0.000000e+00 : f32
    %102 = vector.broadcast %cst_107 : f32 to vector<8x384xf32>
    %103 = arith.maximumf %101, %102 : vector<8x384xf32>
    %104 = arith.addf %103, %77 : vector<8x384xf32>
    %cst_108 = arith.constant 5.000000e-01 : f32
    %105 = vector.broadcast %cst_108 : f32 to vector<8x384xf32>
    %106 = arith.mulf %105, %104 : vector<8x384xf32>
    %cst_109 = arith.constant 4.471500e-02 : f32
    %107 = vector.broadcast %cst_109 : f32 to vector<8x384xf32>
    %108 = arith.mulf %107, %104 : vector<8x384xf32>
    %109 = arith.mulf %108, %104 : vector<8x384xf32>
    %110 = arith.mulf %109, %104 : vector<8x384xf32>
    %111 = arith.addf %104, %110 : vector<8x384xf32>
    %cst_110 = arith.constant 0.797884583 : f32
    %112 = vector.broadcast %cst_110 : f32 to vector<8x384xf32>
    %113 = arith.mulf %112, %111 : vector<8x384xf32>
    %114 = math.tanh %113 : vector<8x384xf32>
    %cst_111 = arith.constant 1.000000e+00 : f32
    %115 = vector.broadcast %cst_111 : f32 to vector<8x384xf32>
    %116 = arith.addf %115, %114 : vector<8x384xf32>
    %117 = arith.mulf %106, %116 : vector<8x384xf32>
    %c0_112 = arith.constant 0 : index
    %c0_113 = arith.constant 0 : index
    %c0_114 = arith.constant 0 : index
    %118 = vector.load %arg7[%c0_112, %c0_113, %c0_114] : memref<1x8x384xf32, #tpu.memory_space<vmem>>, vector<1x8x384xf32>
    %119 = vector.shape_cast %118 : vector<1x8x384xf32> to vector<8x384xf32>
    %120 = vector.shape_cast %117 : vector<8x384xf32> to vector<1x8x384xf32>
    tpu.vector_store %arg7[%c0_112, %c0_113, %c0_114], %120 {strides = array<i32>} : memref<1x8x384xf32, #tpu.memory_space<vmem>>, vector<1x8x384xf32>,
    return
  }
  func.func @transform_0(%arg0: i32) -> (i32, i32, i32) {
    %c0_i32 = arith.constant 0 : i32
    %c0_i32_0 = arith.constant 0 : i32
    %c0_i32_1 = arith.constant 0 : i32
    return %arg0, %c0_i32, %c0_i32_0 : i32, i32, i32
  }
  func.func @transform_1(%arg0: i32) -> (i32, i32) {
    %c0_i32 = arith.constant 0 : i32
    %c0_i32_0 = arith.constant 0 : i32
    %c0_i32_1 = arith.constant 0 : i32
    return %c0_i32, %c0_i32_0 : i32, i32
  }
  func.func @transform_2(%arg0: i32) -> (i32, i32) {
    %c0_i32 = arith.constant 0 : i32
    %c0_i32_0 = arith.constant 0 : i32
    %c0_i32_1 = arith.constant 0 : i32
    return %c0_i32, %c0_i32_0 : i32, i32
  }
  func.func @transform_3(%arg0: i32) -> (i32, i32) {
    %c0_i32 = arith.constant 0 : i32
    %c0_i32_0 = arith.constant 0 : i32
    %c0_i32_1 = arith.constant 0 : i32
    return %c0_i32, %c0_i32_0 : i32, i32
  }
  func.func @transform_4(%arg0: i32) -> (i32, i32) {
    %c0_i32 = arith.constant 0 : i32
    %c0_i32_0 = arith.constant 0 : i32
    %c0_i32_1 = arith.constant 0 : i32
    return %c0_i32, %c0_i32_0 : i32, i32
  }
  func.func @transform_5(%arg0: i32) -> (i32, i32) {
    %c0_i32 = arith.constant 0 : i32
    %c0_i32_0 = arith.constant 0 : i32
    %c0_i32_1 = arith.constant 0 : i32
    return %c0_i32, %c0_i32_0 : i32, i32
  }
  func.func @transform_6(%arg0: i32) -> (i32, i32, i32) {
    %c0_i32 = arith.constant 0 : i32
    %c0_i32_0 = arith.constant 0 : i32
    %c0_i32_1 = arith.constant 0 : i32
    return %arg0, %c0_i32, %c0_i32_0 : i32, i32, i32
  }
}

</mosaic_0001>

<bundles_post_ra>
// kernel: gie_forward.1
= control target key start
LH: loop header
LB: loop body
LE: loop exit
PB: predicated region body
PF: predicated region fallthrough
CT: control target
= control target key end

     0   :  { %s2529_s21 = smov 0   ;;  %s3193_s0 = inlined_call_operand.vmem [shape: f32[2,4,624], index: 0, kind: input, shape index: {}]   ;;  %s3194_s1 = inlined_call_operand.vmem [shape: f32[32,72], index: 1, kind: input, shape index: {}]   ;;  %s3195_s2 = inlined_call_operand.vmem [shape: f32[32,1], index: 2, kind: input, shape index: {}]   ;;  %s3196_s3 = inlined_call_operand.vmem [shape: f32[8,216], index: 3, kind: input, shape index: {}]   ;;  %s3197_s4 = inlined_call_operand.vmem [shape: f32[8,1], index: 4, kind: input, shape index: {}]   ;;  %s3198_s5 = inlined_call_operand.vmem [shape: f32[1,456], index: 5, kind: input, shape index: {}]   ;;  %s3199_s6 = inlined_call_operand.vmem [shape: f32[2,8,384], index: 6, kind: output, shape index: {}]  }
   0x1 LB: > { %s2033_s22 = sadd.s32 4294967295, %s2466_s21   ;;  %p2037_p0 = scmp.ge.s32.totalorder %s2466_s21, 1  ;;  %s2466_s21 = sphi %s2529_s21, %s16_s21  }
   0x2   : > { %p212_p1 = scmp.lt.s32.totalorder %s2466_s21, 3 }
   0x4   : > { %p213_p2 = pnand %p2037_p0, %p212_p1 }
   0x5   : > { %p242_p3 = scmp.lt.s32.totalorder (!%p213_p2), %s2033_s22, 1  ;;  %s2468_s27 = smov (!%p213_p2), 77   ;;  %vm304_vm0 = vcmask (!%p213_p2), 588804   ;;  %vm266_vm1 = vcmask (!%p213_p2), 637952   ;;  %vm293_vm2 = vcmask (!%p213_p2), 629760   ;;  %vm320_vm3 = vcmask (!%p213_p2), 621568  }
   0x6   : > { %216 = sbr.rel (%p213_p2) target bundleno = 979 (0x3d3), region = 44  ;;  %s2469_s28 = smov (!%p213_p2), 78   ;;  %vm351_vm4 = vcmask (!%p213_p2), 441344   ;;  %vm277_vm5 = vcmask (!%p213_p2), 584704   ;;  %v2484_v55 = vmov (!%p213_p2), 0.0   ;;  %vm382_vm6 = vcmask (!%p213_p2), 433152  }
   0x7   : > { %s2470_s29 = smov (!%p213_p2), 76   ;;  %s2471_s30 = smov (!%p213_p2), 54   ;;  %897 = vmatprep.mubr.f32.mxu0 (!%p213_p2), %v2484_v55  ;;  %986 = vmatprep.mubr.f32.mxu1 (!%p213_p2), %v2484_v55  ;;  %vm414_vm7 = vcmask (!%p213_p2), 424960   ;;  %vm445_vm8 = vcmask (!%p213_p2), 244736   ;;  %vm477_vm9 = vcmask (!%p213_p2), 236544   ;;  %vm508_vm10 = vcmask (!%p213_p2), 228352  }
   0x8   : > { %s2472_s7 = smov (!%p213_p2), 53   ;;  %s2473_s8 = smov (!%p213_p2), 52   ;;  %vm547_vm11 = vcmask (!%p213_p2), 1022976   ;;  %vm573_vm12 = vcmask (!%p213_p2), 998400   ;;  %vm603_vm13 = vcmask (!%p213_p2), 457728   ;;  %vm665_vm14 = vcmask (!%p213_p2), 408576  }
   0x9   : > { %s2474_s9 = smov (!%p213_p2), 30   ;;  %s2475_s10 = smov (!%p213_p2), 29   ;;  %vm692_vm15 = vcmask (!%p213_p2), 916480  }
   0xa   : > { %s2476_s11 = smov (!%p213_p2), 28   ;;  %s2477_s12 = smov (!%p213_p2), 125  }
   0xb   : > { %s2478_s13 = smov (!%p213_p2), 122   ;;  %s2479_s14 = smov (!%p213_p2), 56  }
   0xc   : > { %s2480_s15 = smov (!%p213_p2), 50   ;;  %s2481_s16 = smov (!%p213_p2), 112  }
   0xd   : > { %s3201_s22 = smov (!%p242_p3, %s2033_s22), 1  ;;  %s2482_s17 = smov 109  }
   0xe   : > { %s2175_s23 = smul.u32 20, %s3201_s22  ;;  %s2483_s18 = smov 106  }
   0xf   : > { %s2492_s19 = smov 102   ;;  %s2493_s20 = smov 79  }
  0x10   : > { %s2543_s26 = scalar_lea.vmem %s3193_s0, %s2175_s23 }
  0x11   : > { %v2546_v0 = vld [vmem:[%s2543_s26] sm:$0xff]  ;;  %v2549_v1 = vld [vmem:[%s2543_s26 + $0x8] sm:$0xff]  ;;  %v2447_v5 = vld [vmem:[%s2543_s26 + $0x10] ss:$0 sps:$4 sm:$0xff]  }
  0x12   : > { %287 = vrot.lane.b32.xlu1 %v2546_v0, %s2468_s27  ;;  %v2554_v2 = vcombine.low %v2546_v0, %v2546_v0  ;;  %262 = vrot.lane.b32.xlu0 %v2549_v1, %s2469_s28  ;;  %v2560_v3 = vcombine.high %v2546_v0, %v2546_v0  ;;  %530 = vst [vmem:[#allocation2 + $0x88] sm:$0xf0] %v2546_v0  ;;  %532 = vst.msk [vmem:[#allocation2 + $0x98] sm:$0xf0] %vm304_vm0, %v2549_v1  ;;  %v366_v7 = vld [vmem:[%s2543_s26 + $0x10] sm:$0xf] }
  0x13   : > { %v2565_v4 = vcombine.low %v2549_v1, %v2549_v1  ;;  %v2586_v6 = vcombine.high %v2549_v1, %v2549_v1  ;;  %v2448_v8 = vld [vmem:[%s2543_s26 + $0x10] ss:$0 sps:$4 sm:$0xff]   ;;  %v2649_v14 = vld [vmem:[%s2543_s26 + $0x4] sm:$0xff] }
  0x14   : > { %529 = vst [vmem:[#allocation2 + $0x80] sm:$0xf0] %v2554_v2  ;;  %v429_v9 = vld [vmem:[%s2543_s26 + $0x10] sm:$0xf]  ;;  %v682_v29 = vcombine.low %v2649_v14, %v2649_v14  ;;  %v708_v35 = vcombine.high %v2649_v14, %v2649_v14 }
  0x15   : > { %531 = vst [vmem:[#allocation2 + $0x90] sm:$0xf0] %v2565_v4  ;;  %v2449_v10 = vld [vmem:[%s2543_s26 + $0x10] ss:$0 sps:$4 sm:$0xff]  }
  0x16   : > { %316 = vrot.lane.b32.xlu1 %v2549_v1, %s2470_s29  ;;  %260 = vrot.lane.b32.xlu0 %v2560_v3, %s2469_s28  ;;  %v492_v11 = vld [vmem:[%s2543_s26 + $0x10] sm:$0xf] }
  0x17   : > { %v2638_v12 = vld [vmem:[%s2543_s26 + $0xc] sm:$0xff] }
  0x18   : > { %v2646_v13 = vcombine.low %v2638_v12, %v2638_v12  ;;  %v587_v17 = vld [vmem:[%s2543_s26 + $0x10] sm:$0xf]  ;;  %v709_v53 = vcombine.high %v2638_v12, %v2638_v12 }
  0x19   : > { %v2452_v21 = vld [vmem:[%s2543_s26 + $0x10] ss:$0 sps:$4 sm:$0xff]  }
  0x1a   : > { %289 = vrot.lane.b32.xlu1 %v2565_v4, %s2468_s27  ;;  %314 = vrot.lane.b32.xlu0 %v2560_v3, %s2470_s29  ;;  %v649_v30 = vld [vmem:[%s2543_s26 + $0x10] sm:$0xf] }
  0x1e   : > { %345 = vrot.lane.b32.xlu1 %v2565_v4, %s2471_s30  ;;  %343 = vrot.lane.b32.xlu0 %v2546_v0, %s2471_s30 }
  0x22   : > { %285 = vrot.lane.b32.xlu1 %v2554_v2, %s2468_s27  ;;  %258 = vrot.lane.b32.xlu0 %v2546_v0, %s2469_s28 }
  0x26   : > { %341 = vrot.lane.b32.xlu1 %v2554_v2, %s2471_s30  ;;  %312 = vrot.lane.b32.xlu0 %v2546_v0, %s2470_s29 }
  0x2a   : > { %349 = vrot.lane.b32.xlu1 %v2447_v5, %s2471_s30  ;;  %347 = vrot.lane.b32.xlu0 %v2549_v1, %s2471_s30 }
  0x2e   : > { %291 = vrot.lane.b32.xlu1 %v2549_v1, %s2468_s27  ;;  %264 = vrot.lane.b32.xlu0 %v2586_v6, %s2469_s28 }
  0x32   : > { %374 = vrot.lane.b32.xlu1 %v2560_v3, %s2472_s7  ;;  %318 = vrot.lane.b32.xlu0 %v2586_v6, %s2470_s29 }
  0x36   : > { %406 = vrot.lane.b32.xlu1 %v2546_v0, %s2473_s8  ;;  %376 = vrot.lane.b32.xlu0 %v2549_v1, %s2472_s7 }
  0x3a   : > { %437 = vrot.lane.b32.xlu1 %v2560_v3, %s2474_s9  ;;  %408 = vrot.lane.b32.xlu0 %v2565_v4, %s2473_s8 }
  0x3e   : > { %469 = vrot.lane.b32.xlu1 %v2546_v0, %s2475_s10  ;;  %439 = vrot.lane.b32.xlu0 %v2549_v1, %s2474_s9 }
  0x42   : > { %372 = vrot.lane.b32.xlu1 %v2546_v0, %s2472_s7  ;;  %471 = vrot.lane.b32.xlu0 %v2565_v4, %s2475_s10 }
  0x46   : > { %380 = vrot.lane.b32.xlu1 %v366_v7, %s2472_s7  ;;  %378 = vrot.lane.b32.xlu0 %v2586_v6, %s2472_s7  ;;  %v796_v7 = vld [vmem:[%s3195_s2] sm:$0xff] }
  0x4a   : > { %410 = vrot.lane.b32.xlu1 %v2549_v1, %s2473_s8  ;;  %404 = vrot.lane.b32.xlu0 %v2554_v2, %s2473_s8 }
  0x4e   : > { %435 = vrot.lane.b32.xlu1 %v2546_v0, %s2474_s9  ;;  %412 = vrot.lane.b32.xlu0 %v2448_v8, %s2473_s8  ;;  %v797_v8 = vld [vmem:[%s3195_s2 + $0x8] sm:$0xff] }
  0x52   : > { %443 = vrot.lane.b32.xlu1 %v429_v9, %s2474_s9  ;;  %441 = vrot.lane.b32.xlu0 %v2586_v6, %s2474_s9 }
  0x56   : > { %473 = vrot.lane.b32.xlu1 %v2549_v1, %s2475_s10  ;;  %467 = vrot.lane.b32.xlu0 %v2554_v2, %s2475_s10 }
  0x5a   : > { %500 = vrot.lane.b32.xlu1 %v2560_v3, %s2476_s11  ;;  %475 = vrot.lane.b32.xlu0 %v2449_v10, %s2475_s10 }
  0x5e   : > { %541 = vrot.lane.b32.xlu1 %v2560_v3, %s2477_s12  ;;  %502 = vrot.lane.b32.xlu0 %v2549_v1, %s2476_s11 }
  0x62   : > { %567 = vrot.lane.b32.xlu1 %v2546_v0, %s2478_s13  ;;  %543 = vrot.lane.b32.xlu0 %v2549_v1, %s2477_s12 }
  0x66   : > { %498 = vrot.lane.b32.xlu1 %v2546_v0, %s2476_s11  ;;  %569 = vrot.lane.b32.xlu0 %v2565_v4, %s2478_s13 }
  0x6a   : > { %506 = vrot.lane.b32.xlu1 %v492_v11, %s2476_s11  ;;  %504 = vrot.lane.b32.xlu0 %v2586_v6, %s2476_s11  ;;  %v2485_v11 = vmov 0  }
  0x6b   : > { %2211 = vset.pattern.permute.xlu1 %v2485_v11  ;;  %2212 = vset.pattern.permute.xlu0 %v2485_v11 }
  0x6e   : > { %565 = vrot.lane.b32.xlu1 %v2554_v2, %s2478_s13  ;;  %539 = vrot.lane.b32.xlu0 %v2546_v0, %s2477_s12 }
  0x72   : > { %571 = vrot.lane.b32.xlu1 %v2549_v1, %s2478_s13  ;;  %545 = vrot.lane.b32.xlu0 %v2586_v6, %s2477_s12 }
  0x76   : > { %597 = vrot.lane.b32.xlu1 %v2549_v1, %s2479_s14  ;;  %595 = vrot.lane.b32.xlu0 %v2560_v3, %s2479_s14 }
  0x7a   : > { %629 = vrot.lane.b32.xlu1 %v2565_v4, %s2472_s7  ;;  %627 = vrot.lane.b32.xlu0 %v2546_v0, %s2472_s7 }
  0x7e   : > { %659 = vrot.lane.b32.xlu1 %v2549_v1, %s2480_s15  ;;  %657 = vrot.lane.b32.xlu0 %v2560_v3, %s2480_s15 }
  0x82   : > { %688 = vrot.lane.b32.xlu1 %v2646_v13, %s2481_s16  ;;  %686 = vrot.lane.b32.xlu0 %v2649_v14, %s2481_s16 }
  0x84   : > { %v288_v15 = vpop.permute.xlu1 %287  ;;  %v2655_v16 = vpop.permute.xlu0 %262 }
  0x86   : > { %599 = vrot.lane.b32.xlu1 %v2586_v6, %s2479_s14  ;;  %593 = vrot.lane.b32.xlu0 %v2546_v0, %s2479_s14 }
  0x88   : > { %v2660_v18 = vpop.permute.xlu1 %316  ;;  %v261_v19 = vpop.permute.xlu0 %260 }
  0x89   : > { %v268_v20 = vsel %vm266_vm1, %v261_v19, %v2655_v16 }
  0x8a   : > { %275 = vst [vmem:[#allocation2 + $0x8] sm:$0xf] %v268_v20  ;;  %625 = vrot.lane.b32.xlu1 %v2554_v2, %s2472_s7  ;;  %601 = vrot.lane.b32.xlu0 %v587_v17, %s2479_s14  ;;  %s2487_s14 = smov 127  }
  0x8c   : > { %v290_v22 = vpop.permute.xlu1 %289  ;;  %v315_v23 = vpop.permute.xlu0 %314 }
  0x8d   : > { %v295_v24 = vsel %vm293_vm2, %v288_v15, %v290_v22  ;;  %v322_v25 = vsel %vm320_vm3, %v315_v23, %v2660_v18 }
  0x8e   : > { %302 = vst [vmem:[#allocation2 + $0x8] sm:$0xf0] %v295_v24  ;;  %329 = vst [vmem:[#allocation2 + $0x28] sm:$0xf] %v322_v25  ;;  %633 = vrot.lane.b32.xlu1 %v2452_v21, %s2472_s7  ;;  %631 = vrot.lane.b32.xlu0 %v2549_v1, %s2472_s7  ;;  %s2176_s7 = smul.u32 24, %s3201_s22 }
  0x90   : > { %v346_v26 = vpop.permute.xlu1 %345  ;;  %v344_v27 = vpop.permute.xlu0 %343  ;;  %s251_s10 = scalar_lea.vmem %s3199_s6, %s2176_s7 }
  0x91   : > { %v353_v28 = vsel %vm351_vm4, %v344_v27, %v346_v26 }
  0x92   : > { %361 = vst [vmem:[#allocation2 + $0x28] sm:$0xf0] %v353_v28  ;;  %661 = vrot.lane.b32.xlu1 %v2586_v6, %s2480_s15  ;;  %655 = vrot.lane.b32.xlu0 %v2546_v0, %s2480_s15 }
  0x94   : > { %v286_v31 = vpop.permute.xlu1 %285  ;;  %v259_v32 = vpop.permute.xlu0 %258 }
  0x95   : > { %v294_v33 = vsel %vm293_vm2, %v286_v31, %v288_v15  ;;  %v267_v34 = vsel %vm266_vm1, %v259_v32, %v261_v19  ;;  %v761_v40 = vld [vmem:[#allocation2 + $0x8] sm:$0xff] }
  0x96   : > { %301 = vst [vmem:[#allocation2] sm:$0xf0] %v294_v33  ;;  %274 = vst [vmem:[#allocation2] sm:$0xf] %v267_v34  ;;  %684 = vrot.lane.b32.xlu1 %v682_v29, %s2481_s16  ;;  %663 = vrot.lane.b32.xlu0 %v649_v30, %s2480_s15  ;;  %s2488_s15 = smov 126  }
  0x98   : > { %v342_v36 = vpop.permute.xlu1 %341  ;;  %v313_v37 = vpop.permute.xlu0 %312 }
  0x99   : > { %v352_v38 = vsel %vm351_vm4, %v342_v36, %v344_v27  ;;  %v321_v39 = vsel %vm320_vm3, %v313_v37, %v315_v23  ;;  %v765_v41 = vld [vmem:[#allocation2 + $0x28] sm:$0xff] }
  0x9a   : > { %360 = vst [vmem:[#allocation2 + $0x20] sm:$0xf0] %v352_v38  ;;  %328 = vst [vmem:[#allocation2 + $0x20] sm:$0xf] %v321_v39  ;;  %712 = vrot.lane.b32.xlu1 %v708_v35, %s2482_s17  ;;  %690 = vrot.lane.b32.xlu0 %v2638_v12, %s2481_s16  ;;  %v2052_v42 = vpack.c.bf16 %v765_v41, %v761_v40  ;;  %s2489_s16 = smov 103  }
  0x9c   : > { %v350_v43 = vpop.permute.xlu1 %349  ;;  %2053 = vmatprep.subr.bf16.mxu0 %v2052_v42  ;;  %v348_v44 = vpop.permute.xlu0 %347 }
  0x9d   : > { %v354_v45 = vsel %vm351_vm4, %v346_v26, %v348_v44  ;;  %v355_v46 = vsel %vm351_vm4, %v348_v44, %v350_v43  ;;  %v760_v51 = vld [vmem:[#allocation2] sm:$0xff]  ;;  %vm820_vm4 = vcmask 588800  }
  0x9e   : > { %362 = vst [vmem:[#allocation2 + $0x30] sm:$0xf0] %v354_v45  ;;  %363 = vst.msk [vmem:[#allocation2 + $0x38] sm:$0xf0] %vm304_vm0, %v355_v46  ;;  %738 = vrot.lane.b32.xlu1 %v2649_v14, %s2483_s18  ;;  %714 = vrot.lane.b32.xlu0 %v2638_v12, %s2482_s17 }
  0xa0   : > { %v292_v47 = vpop.permute.xlu1 %291  ;;  %v265_v48 = vpop.permute.xlu0 %264 }
  0xa1   : > { %v296_v49 = vsel %vm293_vm2, %v290_v22, %v292_v47  ;;  %305 = vst.msk [vmem:[#allocation2 + $0x18] sm:$0xf0] %vm304_vm0, %v292_v47  ;;  %v269_v50 = vsel %vm266_vm1, %v2655_v16, %v265_v48  ;;  %v764_v52 = vld [vmem:[#allocation2 + $0x20] sm:$0xff]  ;;  %vm718_vm2 = vcmask 891904  }
  0xa2   : > { %278 = vst.msk [vmem:[#allocation2 + $0x18] sm:$0xf] %vm277_vm5, %v265_v48  ;;  %303 = vst [vmem:[#allocation2 + $0x10] sm:$0xf0] %v296_v49  ;;  %710 = vrot.lane.b32.xlu1 %v2649_v14, %s2482_s17  ;;  %740 = vrot.lane.b32.xlu0 %v2646_v13, %s2483_s18  ;;  %v2054_v54 = vpack.c.bf16 %v764_v52, %v760_v51  ;;  %v798_v13 = vld [vmem:[%s3195_s2 + $0x10] sm:$0xff] }
  0xa3   : > { %276 = vst [vmem:[#allocation2 + $0x10] sm:$0xf] %v269_v50 }
  0xa4   : > { %v375_v56 = vpop.permute.xlu1 %374  ;;  %2055 = vmatpush1.bf16.msra.mxu0 %v2054_v54  ;;  %v319_v57 = vpop.permute.xlu0 %318 }
  0xa5   : > { %v323_v58 = vsel %vm320_vm3, %v2660_v18, %v319_v57  ;;  %331 = vst.msk [vmem:[#allocation2 + $0x38] sm:$0xf] %vm277_vm5, %v319_v57  ;;  %vm744_vm3 = vcmask 867328  }
  0xa6   : > { %330 = vst [vmem:[#allocation2 + $0x30] sm:$0xf] %v323_v58  ;;  %716 = vrot.lane.b32.xlu1 %v709_v53, %s2482_s17  ;;  %736 = vrot.lane.b32.xlu0 %v682_v29, %s2483_s18  ;;  %s2490_s17 = smov 80  }
  0xa8   : > { %v407_v59 = vpop.permute.xlu1 %406  ;;  %v377_v60 = vpop.permute.xlu0 %376 }
  0xa9   : > { %v384_v61 = vsel %vm382_vm6, %v375_v56, %v377_v60  ;;  %v763_v0 = vld [vmem:[#allocation2 + $0x18] sm:$0xff] }
  0xaa   : > { %392 = vst [vmem:[#allocation2 + $0x48] sm:$0xf] %v384_v61  ;;  %742 = vrot.lane.b32.xlu0 %v2638_v12, %s2483_s18  ;;  %v762_v4 = vld [vmem:[#allocation2 + $0x10] sm:$0xff]  ;;  %802 = vperm.xlu1 %2211, %v796_v7   ;;  %s2491_s18 = smov 104  }
  0xac   : > { %v438_v62 = vpop.permute.xlu1 %437  ;;  %v409_v63 = vpop.permute.xlu0 %408  ;;  %v767_v1 = vld [vmem:[#allocation2 + $0x38] sm:$0xff] }
  0xad   : > { %v416_v2 = vsel %vm414_vm7, %v407_v59, %v409_v63  ;;  %v2068_v3 = vpack.c.bf16 %v767_v1, %v763_v0  ;;  %v766_v5 = vld [vmem:[#allocation2 + $0x30] sm:$0xff] }
  0xae   : > { %424 = vst [vmem:[#allocation2 + $0x48] sm:$0xf0] %v416_v2  ;;  %v2070_v6 = vpack.c.bf16 %v766_v5, %v762_v4  ;;  %807 = vperm.xlu0 %2212, %v797_v8   ;;  %812 = vperm.xlu1 %2211, %v798_v13  }
  0xaf   : > { %2069 = vmatprep.subr.bf16.mxu1 %v2068_v3 }
  0xb0   : > { %v470_v9 = vpop.permute.xlu1 %469  ;;  %2071 = vmatpush1.bf16.msra.mxu1 %v2070_v6  ;;  %v440_v10 = vpop.permute.xlu0 %439 }
  0xb1   : > { %v447_v12 = vsel %vm445_vm8, %v438_v62, %v440_v10 }
  0xb2   : > { %455 = vst [vmem:[#allocation2 + $0x68] sm:$0xf] %v447_v12 }
  0xb4   : > { %v373_v14 = vpop.permute.xlu1 %372  ;;  %v472_v15 = vpop.permute.xlu0 %471 }
  0xb5   : > { %v383_v16 = vsel %vm382_vm6, %v373_v14, %v375_v56  ;;  %v479_v17 = vsel %vm477_vm9, %v470_v9, %v472_v15  ;;  %v769_v26 = vld [vmem:[#allocation2 + $0x48] sm:$0xff] }
  0xb6   : > { %391 = vst [vmem:[#allocation2 + $0x40] sm:$0xf] %v383_v16  ;;  %487 = vst [vmem:[#allocation2 + $0x68] sm:$0xf0] %v479_v17 }
  0xb8   : > { %v381_v18 = vpop.permute.xlu1 %380  ;;  %v379_v19 = vpop.permute.xlu0 %378 }
  0xb9   : > { %v385_v20 = vsel %vm382_vm6, %v377_v60, %v379_v19  ;;  %v386_v21 = vsel %vm382_vm6, %v379_v19, %v381_v18 }
  0xba   : > { %393 = vst [vmem:[#allocation2 + $0x50] sm:$0xf] %v385_v20  ;;  %394 = vst.msk [vmem:[#allocation2 + $0x58] sm:$0xf] %vm277_vm5, %v386_v21 }
  0xbc   : > { %v411_v22 = vpop.permute.xlu1 %410  ;;  %v405_v23 = vpop.permute.xlu0 %404 }
  0xbd   : > { %v417_v24 = vsel %vm414_vm7, %v409_v63, %v411_v22  ;;  %v415_v25 = vsel %vm414_vm7, %v405_v23, %v407_v59  ;;  %v773_v27 = vld [vmem:[#allocation2 + $0x68] sm:$0xff] }
  0xbe   : > { %425 = vst [vmem:[#allocation2 + $0x50] sm:$0xf0] %v417_v24  ;;  %423 = vst [vmem:[#allocation2 + $0x40] sm:$0xf0] %v415_v25  ;;  %v2056_v28 = vpack.c.bf16 %v773_v27, %v769_v26 }
  0xc0   : > { %v436_v29 = vpop.permute.xlu1 %435  ;;  %2057 = vmatprep.subr.bf16.mxu0 %v2056_v28  ;;  %v413_v30 = vpop.permute.xlu0 %412 }
  0xc1   : > { %v446_v31 = vsel %vm445_vm8, %v436_v29, %v438_v62  ;;  %v418_v32 = vsel %vm414_vm7, %v411_v22, %v413_v30  ;;  %vm1283_vm7 = vcmask 850944  }
  0xc2   : > { %454 = vst [vmem:[#allocation2 + $0x60] sm:$0xf] %v446_v31  ;;  %426 = vst.msk [vmem:[#allocation2 + $0x58] sm:$0xf0] %vm304_vm0, %v418_v32 }
  0xc4   : > { %v444_v33 = vpop.permute.xlu1 %443  ;;  %v442_v34 = vpop.permute.xlu0 %441 }
  0xc5   : > { %v448_v35 = vsel %vm445_vm8, %v440_v10, %v442_v34  ;;  %v449_v36 = vsel %vm445_vm8, %v442_v34, %v444_v33  ;;  %v768_v47 = vld [vmem:[#allocation2 + $0x40] sm:$0xff]  ;;  %v770_v58 = vld [vmem:[#allocation2 + $0x50] sm:$0xff]  ;;  %vm1359_vm8 = vcmask 842752  }
  0xc6   : > { %456 = vst [vmem:[#allocation2 + $0x70] sm:$0xf] %v448_v35  ;;  %457 = vst.msk [vmem:[#allocation2 + $0x78] sm:$0xf] %vm277_vm5, %v449_v36 }
  0xc8   : > { %v474_v37 = vpop.permute.xlu1 %473  ;;  %v468_v38 = vpop.permute.xlu0 %467 }
  0xc9   : > { %v480_v39 = vsel %vm477_vm9, %v472_v15, %v474_v37  ;;  %v478_v40 = vsel %vm477_vm9, %v468_v38, %v470_v9  ;;  %v771_v54 = vld [vmem:[#allocation2 + $0x58] sm:$0xff] }
  0xca   : > { %488 = vst [vmem:[#allocation2 + $0x70] sm:$0xf0] %v480_v39  ;;  %486 = vst [vmem:[#allocation2 + $0x60] sm:$0xf0] %v478_v40 }
  0xcc   : > { %v501_v41 = vpop.permute.xlu1 %500  ;;  %v476_v42 = vpop.permute.xlu0 %475 }
  0xcd   : > { %v481_v43 = vsel %vm477_vm9, %v474_v37, %v476_v42  ;;  %vm1435_vm9 = vcmask 834560  }
  0xce   : > { %489 = vst.msk [vmem:[#allocation2 + $0x78] sm:$0xf0] %vm304_vm0, %v481_v43 }
  0xd0   : > { %v542_v44 = vpop.permute.xlu1 %541  ;;  %v503_v45 = vpop.permute.xlu0 %502 }
  0xd1   : > { %v510_v46 = vsel %vm508_vm10, %v501_v41, %v503_v45  ;;  %v772_v48 = vld [vmem:[#allocation2 + $0x60] sm:$0xff]  ;;  %v774_v52 = vld [vmem:[#allocation2 + $0x70] sm:$0xff] }
  0xd2   : > { %518 = vst [vmem:[#allocation2 + $0x88] sm:$0xf] %v510_v46  ;;  %v2058_v49 = vpack.c.bf16 %v772_v48, %v768_v47  ;;  %v2074_v59 = vpack.c.bf16 %v774_v52, %v770_v58 }
  0xd4   : > { %v568_v50 = vpop.permute.xlu1 %567  ;;  %2059 = vmatpush1.bf16.msra.mxu0 %v2058_v49  ;;  %v544_v51 = vpop.permute.xlu0 %543 }
  0xd5   : > { %v549_v53 = vsel %vm547_vm11, %v542_v44, %v544_v51  ;;  %v775_v56 = vld [vmem:[#allocation2 + $0x78] sm:$0xff] }
  0xd6   : > { %556 = vst [vmem:[#allocation2 + $0xa8] sm:$0xf] %v549_v53  ;;  %v2072_v57 = vpack.c.bf16 %v775_v56, %v771_v54 }
  0xd8   : > { %v499_v60 = vpop.permute.xlu1 %498  ;;  %2073 = vmatprep.subr.bf16.mxu1 %v2072_v57  ;;  %v570_v61 = vpop.permute.xlu0 %569 }
  0xd9   : > { %v509_v62 = vsel %vm508_vm10, %v499_v60, %v501_v41  ;;  %v575_v63 = vsel %vm573_vm12, %v568_v50, %v570_v61  ;;  %2075 = vmatpush1.bf16.msra.mxu1 %v2074_v59  ;;  %v777_v8 = vld [vmem:[#allocation2 + $0x88] sm:$0xff] }
  0xda   : > { %517 = vst [vmem:[#allocation2 + $0x80] sm:$0xf] %v509_v62  ;;  %582 = vst [vmem:[#allocation2 + $0xa8] sm:$0xf0] %v575_v63 }
  0xdc   : > { %v507_v0 = vpop.permute.xlu1 %506  ;;  %v505_v1 = vpop.permute.xlu0 %504 }
  0xdd   : > { %v511_v2 = vsel %vm508_vm10, %v503_v45, %v505_v1  ;;  %v512_v3 = vsel %vm508_vm10, %v505_v1, %v507_v0  ;;  %vm1511_vm10 = vcmask 654336  }
  0xde   : > { %519 = vst [vmem:[#allocation2 + $0x90] sm:$0xf] %v511_v2  ;;  %520 = vst.msk [vmem:[#allocation2 + $0x98] sm:$0xf] %vm277_vm5, %v512_v3 }
  0xe0   : > { %v566_v4 = vpop.permute.xlu1 %565  ;;  %v540_v5 = vpop.permute.xlu0 %539 }
  0xe1   : > { %v574_v6 = vsel %vm573_vm12, %v566_v4, %v568_v50  ;;  %v548_v7 = vsel %vm547_vm11, %v540_v5, %v542_v44  ;;  %v781_v9 = vld [vmem:[#allocation2 + $0xa8] sm:$0xff]  ;;  %v776_v18 = vld [vmem:[#allocation2 + $0x80] sm:$0xff] }
  0xe2   : > { %581 = vst [vmem:[#allocation2 + $0xa0] sm:$0xf0] %v574_v6  ;;  %555 = vst [vmem:[#allocation2 + $0xa0] sm:$0xf] %v548_v7  ;;  %v2060_v10 = vpack.c.bf16 %v781_v9, %v777_v8 }
  0xe4   : > { %v572_v11 = vpop.permute.xlu1 %571  ;;  %2061 = vmatprep.subr.bf16.mxu0 %v2060_v10  ;;  %v546_v12 = vpop.permute.xlu0 %545 }
  0xe5   : > { %v576_v13 = vsel %vm573_vm12, %v570_v61, %v572_v11  ;;  %584 = vst.msk [vmem:[#allocation2 + $0xb8] sm:$0xf0] %vm304_vm0, %v572_v11  ;;  %v550_v14 = vsel %vm547_vm11, %v544_v51, %v546_v12  ;;  %v779_v23 = vld [vmem:[#allocation2 + $0x98] sm:$0xff]  ;;  %v778_v27 = vld [vmem:[#allocation2 + $0x90] sm:$0xff]  ;;  %vm1587_vm11 = vcmask 646144  }
  0xe6   : > { %558 = vst.msk [vmem:[#allocation2 + $0xb8] sm:$0xf] %vm277_vm5, %v546_v12  ;;  %583 = vst [vmem:[#allocation2 + $0xb0] sm:$0xf0] %v576_v13 }
  0xe7   : > { %557 = vst [vmem:[#allocation2 + $0xb0] sm:$0xf] %v550_v14 }
  0xe8   : > { %v598_v15 = vpop.permute.xlu1 %597  ;;  %v596_v16 = vpop.permute.xlu0 %595 }
  0xe9   : > { %v605_v17 = vsel %vm603_vm13, %v596_v16, %v598_v15  ;;  %v780_v19 = vld [vmem:[#allocation2 + $0xa0] sm:$0xff] }
  0xea   : > { %613 = vst [vmem:[#allocation2 + $0xc8] sm:$0xf] %v605_v17  ;;  %v2062_v20 = vpack.c.bf16 %v780_v19, %v776_v18 }
  0xec   : > { %v630_v21 = vpop.permute.xlu1 %629  ;;  %2063 = vmatpush1.bf16.msra.mxu0 %v2062_v20  ;;  %v628_v22 = vpop.permute.xlu0 %627 }
  0xed   : > { %v783_v24 = vld [vmem:[#allocation2 + $0xb8] sm:$0xff]  ;;  %v636_v25 = vsel %vm382_vm6, %v628_v22, %v630_v21 }
  0xee   : > { %v2076_v26 = vpack.c.bf16 %v783_v24, %v779_v23  ;;  %v782_v28 = vld [vmem:[#allocation2 + $0xb0] sm:$0xff]  ;;  %644 = vst [vmem:[#allocation2 + $0xc8] sm:$0xf0] %v636_v25  ;;  %v757_v25 = vld [vmem:[%s3194_s1 + $0x8] sm:$0xff] }
  0xef   : > { %v2078_v29 = vpack.c.bf16 %v782_v28, %v778_v27  ;;  %v758_v27 = vld [vmem:[%s3194_s1 + $0x10] sm:$0xff]  ;;  %v2486_v28 = vmov 0.0|0.0  }
  0xf0   : > { %2077 = vmatprep.subr.bf16.mxu1 %v2076_v26  ;;  %v660_v30 = vpop.permute.xlu1 %659  ;;  %v658_v31 = vpop.permute.xlu0 %657 }
  0xf1   : > { %2079 = vmatpush1.bf16.msra.mxu1 %v2078_v29  ;;  %v667_v32 = vsel %vm665_vm14, %v658_v31, %v660_v30  ;;  %v759_v29 = vld [vmem:[%s3194_s1 + $0x18] sm:$0xff] }
  0xf2   : > { %675 = vst [vmem:[#allocation2 + $0xe8] sm:$0xf] %v667_v32 }
  0xf4   : > { %v689_v33 = vpop.permute.xlu1 %688  ;;  %v687_v34 = vpop.permute.xlu0 %686 }
  0xf5   : > { %v694_v35 = vsel %vm692_vm15, %v687_v34, %v689_v33  ;;  %v785_v44 = vld [vmem:[#allocation2 + $0xc8] sm:$0xff] }
  0xf6   : > { %701 = vst [vmem:[#allocation2 + $0xe8] sm:$0xf0] %v694_v35 }
  0xf8   : > { %v600_v36 = vpop.permute.xlu1 %599  ;;  %v594_v37 = vpop.permute.xlu0 %593 }
  0xf9   : > { %v606_v38 = vsel %vm603_vm13, %v598_v15, %v600_v36  ;;  %v604_v39 = vsel %vm603_vm13, %v594_v37, %v596_v16 }
  0xfa   : > { %614 = vst [vmem:[#allocation2 + $0xd0] sm:$0xf] %v606_v38  ;;  %612 = vst [vmem:[#allocation2 + $0xc0] sm:$0xf] %v604_v39 }
  0xfc   : > { %v626_v40 = vpop.permute.xlu1 %625  ;;  %v602_v41 = vpop.permute.xlu0 %601 }
  0xfd   : > { %v635_v42 = vsel %vm382_vm6, %v626_v40, %v628_v22  ;;  %v607_v43 = vsel %vm603_vm13, %v600_v36, %v602_v41  ;;  %v789_v45 = vld [vmem:[#allocation2 + $0xe8] sm:$0xff]  ;;  %v756_v22 = vld [vmem:[%s3194_s1] sm:$0xff] }
  0xfe   : > { %643 = vst [vmem:[#allocation2 + $0xc0] sm:$0xf0] %v635_v42  ;;  %615 = vst.msk [vmem:[#allocation2 + $0xd8] sm:$0xf] %vm277_vm5, %v607_v43  ;;  %v2064_v46 = vpack.c.bf16 %v789_v45, %v785_v44 }
 0x100   : > { %v634_v47 = vpop.permute.xlu1 %633  ;;  %2065 = vmatprep.subr.bf16.mxu0 %v2064_v46  ;;  %v632_v48 = vpop.permute.xlu0 %631 }
 0x101   : > { %v637_v49 = vsel %vm382_vm6, %v630_v21, %v632_v48  ;;  %v638_v50 = vsel %vm382_vm6, %v632_v48, %v634_v47  ;;  %vm1207_vm6 = vcmask 1031168  }
 0x102   : > { %645 = vst [vmem:[#allocation2 + $0xd0] sm:$0xf0] %v637_v49  ;;  %646 = vst.msk [vmem:[#allocation2 + $0xd8] sm:$0xf0] %vm304_vm0, %v638_v50 }
 0x104   : > { %v662_v51 = vpop.permute.xlu1 %661  ;;  %v656_v52 = vpop.permute.xlu0 %655 }
 0x105   : > { %v668_v53 = vsel %vm665_vm14, %v660_v30, %v662_v51  ;;  %v666_v54 = vsel %vm665_vm14, %v656_v52, %v658_v31  ;;  %v784_v2 = vld [vmem:[#allocation2 + $0xc0] sm:$0xff]  ;;  %v1013_v30 = vlaneseq }
 0x106   : > { %676 = vst [vmem:[#allocation2 + $0xf0] sm:$0xf] %v668_v53  ;;  %674 = vst [vmem:[#allocation2 + $0xe0] sm:$0xf] %v666_v54 }
 0x107   : > { %v1014_v31 = vshrl.u32 %v1013_v30, 7 }
 0x108   : > { %v685_v56 = vpop.permute.xlu1 %684  ;;  %v664_v57 = vpop.permute.xlu0 %663 }
 0x109   : > { %v693_v58 = vsel %vm692_vm15, %v685_v56, %v687_v34  ;;  %v669_v59 = vsel %vm665_vm14, %v662_v51, %v664_v57  ;;  %v787_v7 = vld [vmem:[#allocation2 + $0xd8] sm:$0xff]  ;;  %v786_v12 = vld [vmem:[#allocation2 + $0xd0] sm:$0xff]  ;;  %v1015_v32 = vsub.s32 0, %v1014_v31  ;;  %v1019_v34 = vsub.s32 1, %v1014_v31 }
 0x10a   : > { %700 = vst [vmem:[#allocation2 + $0xe0] sm:$0xf0] %v693_v58  ;;  %677 = vst.msk [vmem:[#allocation2 + $0xf8] sm:$0xf] %vm277_vm5, %v669_v59  ;;  %v1023_v36 = vsub.s32 2, %v1014_v31  ;;  %v1027_v40 = vsub.s32 3, %v1014_v31 }
 0x10c   : > { %v713_v60 = vpop.permute.xlu1 %712  ;;  %v691_v61 = vpop.permute.xlu0 %690 }
 0x10d   : > { %v695_v62 = vsel %vm692_vm15, %v689_v33, %v691_v61  ;;  %703 = vst.msk [vmem:[#allocation2 + $0xf8] sm:$0xf0] %vm304_vm0, %v691_v61  ;;  %v1011_v33 = vld [vmem:[%s3198_s5] sm:$0xf] }
 0x10e   : > { %702 = vst [vmem:[#allocation2 + $0xf0] sm:$0xf0] %v695_v62  ;;  %v1016_v35 = vrot.slane %v1011_v33, %v1015_v32  ;;  %v1020_v39 = vrot.slane %v1011_v33, %v1019_v34  ;;  %v1024_v46 = vrot.slane %v1011_v33, %v1023_v36  ;;  %v1028_v50 = vrot.slane %v1011_v33, %v1027_v40 }
 0x110   : > { %v739_v63 = vpop.permute.xlu1 %738  ;;  %v715_v0 = vpop.permute.xlu0 %714 }
 0x111   : > { %v720_v1 = vsel %vm718_vm2, %v713_v60, %v715_v0  ;;  %v788_v3 = vld [vmem:[#allocation2 + $0xe0] sm:$0xff] }
 0x112   : > { %727 = vst [vmem:[#allocation2 + $0x108] sm:$0xf] %v720_v1  ;;  %v2066_v4 = vpack.c.bf16 %v788_v3, %v784_v2 }
 0x114   : > { %v711_v5 = vpop.permute.xlu1 %710  ;;  %2067 = vmatpush1.bf16.msra.mxu0 %v2066_v4  ;;  %v741_v6 = vpop.permute.xlu0 %740  ;;  %v791_v8 = vld [vmem:[#allocation2 + $0xf8] sm:$0xff] }
 0x115   : > { %v719_v9 = vsel %vm718_vm2, %v711_v5, %v713_v60  ;;  %v746_v10 = vsel %vm744_vm3, %v739_v63, %v741_v6  ;;  %v2080_v11 = vpack.c.bf16 %v791_v8, %v787_v7  ;;  %v790_v13 = vld [vmem:[#allocation2 + $0xf0] sm:$0xff] }
 0x116   : > { %726 = vst [vmem:[#allocation2 + $0x100] sm:$0xf] %v719_v9  ;;  %753 = vst [vmem:[#allocation2 + $0x108] sm:$0xf0] %v746_v10  ;;  %v2082_v14 = vpack.c.bf16 %v790_v13, %v786_v12 }
 0x117   : > { %2081 = vmatprep.subr.bf16.mxu1 %v2080_v11 }
 0x118   : > { %v717_v15 = vpop.permute.xlu1 %716  ;;  %2083 = vmatpush1.bf16.msra.mxu1 %v2082_v14  ;;  %v737_v16 = vpop.permute.xlu0 %736 }
 0x119   : > { %v721_v17 = vsel %vm718_vm2, %v715_v0, %v717_v15  ;;  %729 = vst.msk [vmem:[#allocation2 + $0x118] sm:$0xf] %vm277_vm5, %v717_v15  ;;  %v745_v18 = vsel %vm744_vm3, %v737_v16, %v739_v63  ;;  %vm1131_vm5 = vcmask 1039360  }
 0x11a   : > { %728 = vst [vmem:[#allocation2 + $0x110] sm:$0xf] %v721_v17  ;;  %752 = vst [vmem:[#allocation2 + $0x100] sm:$0xf0] %v745_v18 }
 0x11c   : > { %v743_v19 = vpop.permute.xlu0 %742 }
 0x11d   : > { %v747_v20 = vsel %vm744_vm3, %v741_v6, %v743_v19  ;;  %755 = vst.msk [vmem:[#allocation2 + $0x118] sm:$0xf0] %vm304_vm0, %v743_v19  ;;  %v793_v21 = vld [vmem:[#allocation2 + $0x108] sm:$0xff]  ;;  %vm1779_vm0 = vcmask 719872  }
 0x11e   : > { %754 = vst [vmem:[#allocation2 + $0x110] sm:$0xf0] %v747_v20  ;;  %849 = vmatprep.subr.mxu0 %v793_v21 }
 0x121   : > { %v792_v23 = vld [vmem:[#allocation2 + $0x100] sm:$0xff] }
 0x122   : > { %850 = vmatpush1.msra.mxu0 %v792_v23 }
 0x123   : > { %2040 = vmatmul.mubr.msk.f32.vlgmr.msra.gmra.mrb[0].mxu0 %vm820_vm4, %v756_v22 }
 0x124   : > { %v795_v24 = vld [vmem:[#allocation2 + $0x118] sm:$0xff]  ;;  %903 = vmatprep.mubr.f32.mxu0 %v2484_v55 }
 0x125   : > { %938 = vmatprep.subr.mxu1 %v795_v24  ;;  %v794_v26 = vld [vmem:[#allocation2 + $0x110] sm:$0xff] }
 0x126   : > { %939 = vmatpush1.msra.mxu1 %v794_v26 }
 0x127   : > { %2041 = vmatmul.mubr.msk.f32.gmra.mrb[2].mxu0 %vm820_vm4, %v757_v25  ;;  %2044 = vmatmul.mubr.msk.f32.vlgmr.msra.gmra.mrb[0].mxu1 %vm820_vm4, %v756_v22 }
 0x128   : > { %909 = vmatprep.mubr.f32.mxu0 %v2484_v55  ;;  %992 = vmatprep.mubr.f32.mxu1 %v2484_v55 }
 0x129   : > { %2136 = vmatprep.subr.bf16.mxu1 %v2486_v28  ;;  %v803_v37 = vpop.permute.xlu1 %802 }
 0x12b   : > { %2042 = vmatmul.mubr.msk.f32.gmra.mrb[4].mxu0 %vm820_vm4, %v758_v27  ;;  %2045 = vmatmul.mubr.msk.f32.gmra.mrb[2].mxu1 %vm820_vm4, %v757_v25 }
 0x12c   : > { %998 = vmatprep.mubr.f32.mxu1 %v2484_v55  ;;  %915 = vmatprep.mubr.f32.mxu0 %v2484_v55 }
 0x12d   : > { %v808_v44 = vpop.permute.xlu0 %807  ;;  %v813_v58 = vpop.permute.xlu1 %812 }
 0x12f   : > { %2046 = vmatmul.mubr.msk.f32.gmra.mrb[4].mxu1 %vm820_vm4, %v758_v27  ;;  %2043 = vmatmul.mubr.msk.f32.gmra.mrb[6].mxu0 %vm820_vm4, %v759_v29 }
 0x130   : > { %1004 = vmatprep.mubr.f32.mxu1 %v2484_v55 }
 0x133   : > { %2047 = vmatmul.mubr.msk.f32.gmra.mrb[6].mxu1 %vm820_vm4, %v759_v29 }
 0x1f6   : > { %v899_v38 = vpop.f32.mrb[0].mxu0 }
 0x1f7   : > { %v900_v41 = vadd.f32 %v899_v38, %v803_v37  ;;  %v901_v42 = vpop.f32.mrb[1].mxu0 }
 0x1f8   : > { %v902_v43 = vadd.f32 %v901_v42, %v803_v37  ;;  %v799_v42 = vld [vmem:[%s3195_s2 + $0x18] sm:$0xff] }
 0x1f9   : > { %v1033_v45 = vmul.f32 %v1016_v35, %v900_v41  ;;  %v1691_v41 = vld [vmem:[%s3196_s3 + $0x8] sm:$0xff] }
 0x1fa   : > { %v1034_v47 = vmul.f32 %v1020_v39, %v902_v43  ;;  %v905_v48 = vpop.f32.mrb[2].mxu0  ;;  %v988_v49 = vpop.f32.mrb[0].mxu1  ;;  %2048 = vmatprep.mubr.msk.f32.mxu0 %vm1779_vm0, %v1691_v41  ;;  %2049 = vmatprep.mubr.msk.f32.mxu1 %vm1779_vm0, %v1691_v41 }
 0x1fb   : > { %v989_v51 = vadd.f32 %v988_v49, %v803_v37  ;;  %v906_v52 = vadd.f32 %v905_v48, %v808_v44  ;;  %v907_v53 = vpop.f32.mrb[3].mxu0  ;;  %v990_v54 = vpop.f32.mrb[1].mxu1 }
 0x1fc   : > { %v908_v56 = vadd.f32 %v907_v53, %v808_v44  ;;  %v991_v57 = vadd.f32 %v990_v54, %v803_v37 }
 0x1fd   : > { %v1035_v59 = vmul.f32 %v1024_v46, %v989_v51  ;;  %v1041_v60 = vmax.f32 %v906_v52, 0.0 }
 0x1fe   : > { %v1042_v61 = vmax.f32 %v908_v56, 0.0  ;;  %v1036_v62 = vmul.f32 %v1028_v50, %v991_v57  ;;  %v911_v63 = vpop.f32.mrb[4].mxu0  ;;  %v994_v0 = vpop.f32.mrb[2].mxu1 }
 0x1ff   : > { %v2818_v1 = vmul.f32 %v1041_v60, %v1016_v35  ;;  %v912_v2 = vadd.f32 %v911_v63, %v813_v58  ;;  %v995_v3 = vadd.f32 %v994_v0, %v808_v44  ;;  %v913_v4 = vpop.f32.mrb[5].mxu0  ;;  %v996_v5 = vpop.f32.mrb[3].mxu1  ;;  %v2820_v6 = vpack.i.bf16 %v1035_v59, %v1034_v47 }
 0x200   : > { %v1046_v7 = vmul.f32 %v1042_v61, %v1020_v39  ;;  %1040 = vst.msk [vmem:[#allocation3 + $0x18] sm:$0xff] %vm820_vm4, %v1036_v62  ;;  %v914_v8 = vadd.f32 %v913_v4, %v813_v58  ;;  %v997_v9 = vadd.f32 %v996_v5, %v808_v44 }
 0x201   : > { %v1053_v10 = vmax.f32 %v912_v2, 0.0  ;;  %v1043_v11 = vmax.f32 %v995_v3, 0.0  ;;  %2214 = vrot.lane.b32.xlu1 %v2820_v6, %s2487_s14  ;;  %v2086_v12 = vpack.c.bf16 %v2818_v1, %v1033_v45  ;;  %v2827_v13 = vpack.i.bf16 %v2818_v1, %v1033_v45 }
 0x202   : > { %v1054_v14 = vmax.f32 %v914_v8, 0.0  ;;  %v1044_v15 = vmax.f32 %v997_v9, 0.0  ;;  %v1000_v16 = vpop.f32.mrb[4].mxu1  ;;  %v2084_v17 = vpack.c.bf16 %v1046_v7, %v1034_v47  ;;  %v2903_v43 = vpop.f32.mrb[6].mxu0  ;;  %v1773_v47 = vld [vmem:[%s3197_s4] sm:$0xff] }
 0x203   : > { %v2829_v18 = vmul.f32 %v1053_v10, %v1016_v35  ;;  %v1047_v19 = vmul.f32 %v1043_v11, %v1024_v46  ;;  %v1001_v20 = vadd.f32 %v1000_v16, %v813_v58  ;;  %v1002_v21 = vpop.f32.mrb[5].mxu1 }
 0x204   : > { %v2831_v22 = vmul.f32 %v1054_v14, %v1020_v39  ;;  %v1048_v23 = vmul.f32 %v1044_v15, %v1028_v50  ;;  %v1003_v24 = vadd.f32 %v1002_v21, %v813_v58  ;;  %2085 = vmatprep.subr.bf16.mxu0 %v2084_v17 }
 0x205   : > { %v1055_v25 = vmax.f32 %v1001_v20, 0.0  ;;  %2224 = vrot.lane.b32.xlu1 %v2820_v6, %s2488_s15  ;;  %2087 = vmatpush1.bf16.msra.mxu0 %v2086_v12  ;;  %v2137_v26 = vpack.c.bf16 %v1047_v19, %v1035_v59  ;;  %v2278_v27 = vpack.i.bf16 %v1047_v19, %v1046_v7  ;;  %v2318_v36 = vpack.i.bf16 %v2829_v18, %v2818_v1 }
 0x206   : > { %1052 = vst.msk [vmem:[#allocation3 + $0x38] sm:$0xff] %vm820_vm4, %v1048_v23  ;;  %v1056_v29 = vmax.f32 %v1003_v24, 0.0  ;;  %v2905_v44 = vpop.f32.mrb[6].mxu1 }
 0x207   : > { %v2836_v30 = vmul.f32 %v1055_v25, %v1024_v46  ;;  %v1086_v31 = vld [vmem:[#allocation3 + $0x18] sm:$0xff]  ;;  %2138 = vmatpush1.bf16.msra.mxu1 %v2137_v26  ;;  %v2909_v46 = vpop.f32.mrb[7].mxu1 }
 0x208   : > { %v1060_v32 = vmul.f32 %v1056_v29, %v1028_v50  ;;  %v2218_v33 = vpack.i.bf16 %v1086_v31, %v1033_v45  ;;  %2139 = vmatprep.subr.bf16.mxu1 %v2486_v28  ;;  %v2907_v45 = vpop.f32.mrb[7].mxu0 }
 0x209   : > { %2239 = vrot.lane.b32.xlu1 %v2820_v6, %s2489_s16  ;;  %v2333_v37 = vpack.i.bf16 %v2836_v30, %v2831_v22 }
 0x20a   : > { %1064 = vst.msk [vmem:[#allocation3 + $0x58] sm:$0xff] %vm820_vm4, %v1060_v32  ;;  %2219 = vrot.lane.b32.xlu0 %v2218_v33, %s2487_s14 }
 0x20d   : > { %2254 = vrot.lane.b32.xlu1 %v2820_v6, %s2490_s17  ;;  %v1166_v34 = vld [vmem:[#allocation3 + $0x38] sm:$0xff] }
 0x20e   : > { %2229 = vrot.lane.b32.xlu0 %v2820_v6, %s2491_s18  ;;  %v2283_v35 = vpack.i.bf16 %v1166_v34, %v1086_v31 }
 0x211   : > { %2259 = vrot.lane.b32.xlu1 %v2827_v13, %s2488_s15  ;;  %v1094_v38 = vld [vmem:[#allocation3 + $0x58] sm:$0xff] }
 0x212   : > { %2234 = vrot.lane.b32.xlu0 %v2218_v33, %s2491_s18  ;;  %v2353_v39 = vpack.i.bf16 %v1094_v38, %v2829_v18  ;;  %v2338_v40 = vpack.i.bf16 %v1094_v38, %v1166_v34 }
 0x215   : > { %2264 = vrot.lane.b32.xlu1 %v2827_v13, %s2489_s16 }
 0x216   : > { %2244 = vrot.lane.b32.xlu0 %v2820_v6, %s2492_s19 }
 0x219   : > { %2269 = vrot.lane.b32.xlu1 %v2827_v13, %s2490_s17 }
 0x21a   : > { %2249 = vrot.lane.b32.xlu0 %v2218_v33, %s2492_s19 }
 0x21d   : > { %2274 = vrot.lane.b32.xlu1 %v2278_v27, %s2487_s14 }
 0x21e   : > { %2279 = vrot.lane.b32.xlu0 %v2278_v27, %s2488_s15 }
 0x221   : > { %2289 = vrot.lane.b32.xlu1 %v2278_v27, %s2491_s18 }
 0x222   : > { %2284 = vrot.lane.b32.xlu0 %v2283_v35, %s2488_s15 }
 0x225   : > { %2304 = vrot.lane.b32.xlu1 %v2278_v27, %s2492_s19 }
 0x226   : > { %2294 = vrot.lane.b32.xlu0 %v2278_v27, %s2489_s16 }
 0x229   : > { %2319 = vrot.lane.b32.xlu1 %v2318_v36, %s2487_s14 }
 0x22a   : > { %2299 = vrot.lane.b32.xlu0 %v2283_v35, %s2489_s16 }
 0x22d   : > { %2324 = vrot.lane.b32.xlu1 %v2318_v36, %s2491_s18 }
 0x22e   : > { %2309 = vrot.lane.b32.xlu0 %v2278_v27, %s2490_s17 }
 0x231   : > { %2329 = vrot.lane.b32.xlu1 %v2318_v36, %s2492_s19 }
 0x232   : > { %2314 = vrot.lane.b32.xlu0 %v2283_v35, %s2490_s17 }
 0x235   : > { %2349 = vrot.lane.b32.xlu1 %v2333_v37, %s2488_s15 }
 0x236   : > { %2334 = vrot.lane.b32.xlu0 %v2333_v37, %s2487_s14 }
 0x239   : > { %2354 = vrot.lane.b32.xlu1 %v2353_v39, %s2488_s15 }
 0x23a   : > { %2339 = vrot.lane.b32.xlu0 %v2338_v40, %s2487_s14 }
 0x23d   : > { %2374 = vrot.lane.b32.xlu1 %v2278_v27, %s2493_s20 }
 0x23e   : > { %2344 = vrot.lane.b32.xlu0 %v2820_v6, %s2493_s20 }
 0x241   : > { %2379 = vrot.lane.b32.xlu1 %v2333_v37, %s2489_s16 }
 0x242   : > { %2359 = vrot.lane.b32.xlu0 %v2333_v37, %s2491_s18 }
 0x245   : > { %2384 = vrot.lane.b32.xlu1 %v2353_v39, %s2489_s16 }
 0x246   : > { %2364 = vrot.lane.b32.xlu0 %v2338_v40, %s2491_s18 }
 0x249   : > { %2389 = vrot.lane.b32.xlu1 %v2318_v36, %s2493_s20 }
 0x24a   : > { %2369 = vrot.lane.b32.xlu0 %v2218_v33, %s2493_s20 }
 0x24d   : > { %2404 = vrot.lane.b32.xlu1 %v2333_v37, %s2490_s17 }
 0x24e   : > { %2394 = vrot.lane.b32.xlu0 %v2333_v37, %s2492_s19 }
 0x251   : > { %2409 = vrot.lane.b32.xlu1 %v2353_v39, %s2490_s17 }
 0x252   : > { %2399 = vrot.lane.b32.xlu0 %v2338_v40, %s2492_s19 }
 0x255   : > { %2414 = vrot.lane.b32.xlu1 %v2820_v6, %s2469_s28 }
 0x256   : > { %2419 = vrot.lane.b32.xlu0 %v2278_v27, %s2469_s28 }
 0x259   : > { %2424 = vrot.lane.b32.xlu1 %v2827_v13, %s2469_s28 }
 0x25a   : > { %2429 = vrot.lane.b32.xlu0 %v2333_v37, %s2493_s20 }
 0x25d   : > { %1657 = vrot.lane.b32.xlu1 %v2831_v22, %s2469_s28 }
 0x25e   : > { %2434 = vrot.lane.b32.xlu0 %v2338_v40, %s2493_s20 }
 0x261   : > { %1655 = vrot.lane.b32.xlu1 %v2829_v18, %s2469_s28 }
 0x262   : > { %2439 = vrot.lane.b32.xlu0 %v2283_v35, %s2469_s28 }
 0x265   : > { %817 = vperm.xlu1 %2211, %v799_v42  }
 0x266   : > { %1659 = vrot.lane.b32.xlu0 %v2836_v30, %s2469_s28 }
 0x26a   : > { %1661 = vrot.lane.b32.xlu0 %v1094_v38, %s2469_s28 }
 0x26e   : > { %1776 = vperm.xlu0 %2212, %v1773_v47  }
 0x273   : > { %v2215_v48 = vpop.permute.xlu1 %2214 }
 0x274   : > { %v2217_v49 = vunpack.i.h.bf16 %v2215_v48  ;;  %v2216_v50 = vunpack.i.l.bf16 %v2215_v48 }
 0x276   : > { %v1133_v51 = vsel %vm1131_vm5, %v2216_v50, %v2217_v49 }
 0x277   : > { %v2918_v52 = vpop.permute.xlu1 %2224  ;;  %v2088_v53 = vpack.c.bf16 %v1133_v51, %v2831_v22 }
 0x278   : > { %v2227_v17 = vunpack.i.h.bf16 %v2918_v52 }
 0x279   : > { %2089 = vmatprep.subr.bf16.mxu0 %v2088_v53 }
 0x27b   : > { %v2921_v54 = vpop.permute.xlu1 %2239 }
 0x27c   : > { %v2220_v56 = vpop.permute.xlu0 %2219  ;;  %v2242_v22 = vunpack.i.h.bf16 %v2921_v54  ;;  %v2241_v23 = vunpack.i.l.bf16 %v2921_v54 }
 0x27d   : > { %v2222_v57 = vunpack.i.h.bf16 %v2220_v56  ;;  %v2221_v58 = vunpack.i.l.bf16 %v2220_v56 }
 0x27e   : > { %v2991_v37 = vsel %vm1359_vm8, %v2241_v23, %v2242_v22 }
 0x27f   : > { %v1134_v59 = vsel %vm1131_vm5, %v2217_v49, %v2222_v57  ;;  %v1132_v60 = vsel %vm1131_vm5, %v2221_v58, %v2216_v50  ;;  %v2925_v61 = vpop.permute.xlu1 %2254 }
 0x280   : > { %v2140_v62 = vpack.c.bf16 %v1134_v59, %v2836_v30  ;;  %v2090_v63 = vpack.c.bf16 %v1132_v60, %v2829_v18  ;;  %v2929_v0 = vpop.permute.xlu0 %2229  ;;  %v2226_v18 = vunpack.i.l.bf16 %v2918_v52 }
 0x281   : > { %v2232_v20 = vunpack.i.h.bf16 %v2929_v0  ;;  %v2231_v21 = vunpack.i.l.bf16 %v2929_v0 }
 0x282   : > { %2091 = vmatpush1.bf16.msra.mxu0 %v2090_v63  ;;  %2141 = vmatpush1.bf16.msra.mxu1 %v2140_v62  ;;  %v1209_v32 = vsel %vm1207_vm6, %v2226_v18, %v2227_v17 }
 0x283   : > { %v2260_v1 = vpop.permute.xlu1 %2259  ;;  %2142 = vmatprep.subr.bf16.mxu1 %v2486_v28  ;;  %v2984_v36 = vsel %vm1283_vm7, %v2231_v21, %v2232_v20 }
 0x284   : > { %v2932_v2 = vpop.permute.xlu0 %2234  ;;  %v2262_v33 = vunpack.i.h.bf16 %v2260_v1  ;;  %v2261_v34 = vunpack.i.l.bf16 %v2260_v1 }
 0x285   : > { %v2237_v38 = vunpack.i.h.bf16 %v2932_v2  ;;  %v2236_v42 = vunpack.i.l.bf16 %v2932_v2 }
 0x286   : > { %v1208_v58 = vsel %vm1207_vm6, %v2261_v34, %v2226_v18 }
 0x287   : > { %v2934_v3 = vpop.permute.xlu1 %2264  ;;  %v1284_v52 = vsel %vm1283_vm7, %v2236_v42, %v2231_v21 }
 0x288   : > { %v2936_v4 = vpop.permute.xlu0 %2244 }
 0x289   : > { %v2246_v18 = vunpack.i.l.bf16 %v2936_v4 }
 0x28b   : > { %v2938_v5 = vpop.permute.xlu1 %2269 }
 0x28c   : > { %v2940_v6 = vpop.permute.xlu0 %2249 }
 0x28f   : > { %v2942_v7 = vpop.permute.xlu1 %2274 }
 0x290   : > { %v2944_v8 = vpop.permute.xlu0 %2279  ;;  %v2277_v25 = vunpack.i.h.bf16 %v2942_v7  ;;  %v2276_v29 = vunpack.i.l.bf16 %v2942_v7 }
 0x291   : > { %v2282_v26 = vunpack.i.h.bf16 %v2944_v8  ;;  %v2281_v27 = vunpack.i.l.bf16 %v2944_v8 }
 0x292   : > { %v1136_v48 = vsel %vm1131_vm5, %v2276_v29, %v2277_v25 }
 0x293   : > { %v2946_v9 = vpop.permute.xlu1 %2289  ;;  %v1212_v49 = vsel %vm1207_vm6, %v2281_v27, %v2282_v26  ;;  %v1211_v59 = vsel %vm1207_vm6, %v2262_v33, %v2281_v27 }
 0x294   : > { %v2948_v10 = vpop.permute.xlu0 %2284 }
 0x295   : > { %v2287_v1 = vunpack.i.h.bf16 %v2948_v10  ;;  %v2286_v2 = vunpack.i.l.bf16 %v2948_v10  ;;  %v2098_v10 = vpack.c.bf16 %v1211_v59, %v1208_v58 }
 0x297   : > { %v2950_v11 = vpop.permute.xlu1 %2304 }
 0x298   : > { %v2952_v12 = vpop.permute.xlu0 %2294 }
 0x29b   : > { %v2320_v13 = vpop.permute.xlu1 %2319 }
 0x29c   : > { %v2954_v14 = vpop.permute.xlu0 %2299  ;;  %v2321_v30 = vunpack.i.l.bf16 %v2320_v13  ;;  %v2322_v39 = vunpack.i.h.bf16 %v2320_v13  ;;  %v2247_v13 = vunpack.i.h.bf16 %v2936_v4 }
 0x29e   : > { %v1135_v47 = vsel %vm1131_vm5, %v2321_v30, %v2276_v29  ;;  %v2266_v29 = vunpack.i.l.bf16 %v2934_v3  ;;  %v2096_v30 = vpack.c.bf16 %v1212_v49, %v1209_v32  ;;  %v1213_v32 = vsel %vm1207_vm6, %v2282_v26, %v2287_v1 }
 0x29f   : > { %v2956_v15 = vpop.permute.xlu1 %2324  ;;  %v2257_v26 = vunpack.i.h.bf16 %v2925_v61 }
 0x2a0   : > { %v2958_v16 = vpop.permute.xlu0 %2309 }
 0x2a3   : > { %v2962_v19 = vpop.permute.xlu1 %2329 }
 0x2a4   : > { %v2968_v24 = vpop.permute.xlu0 %2314 }
 0x2a7   : > { %v2974_v31 = vpop.permute.xlu1 %2349 }
 0x2a8   : > { %v2335_v35 = vpop.permute.xlu0 %2334  ;;  %v2352_v53 = vunpack.i.h.bf16 %v2974_v31  ;;  %v2351_v56 = vunpack.i.l.bf16 %v2974_v31 }
 0x2a9   : > { %v2337_v40 = vunpack.i.h.bf16 %v2335_v35  ;;  %v2336_v41 = vunpack.i.l.bf16 %v2335_v35 }
 0x2aa   : > { %v1215_v34 = vsel %vm1207_vm6, %v2351_v56, %v2352_v53 }
 0x2ab   : > { %v1138_v50 = vsel %vm1131_vm5, %v2322_v39, %v2336_v41  ;;  %v1139_v51 = vsel %vm1131_vm5, %v2336_v41, %v2337_v40  ;;  %v2355_v57 = vpop.permute.xlu1 %2354  ;;  %v2292_v39 = vunpack.i.h.bf16 %v2946_v9  ;;  %v2291_v41 = vunpack.i.l.bf16 %v2946_v9 }
 0x2ac   : > { %v2094_v60 = vpack.c.bf16 %v1138_v50, %v1135_v47  ;;  %v2340_v62 = vpop.permute.xlu0 %2339  ;;  %v2092_v63 = vpack.c.bf16 %v1139_v51, %v1136_v48  ;;  %v2356_v31 = vunpack.i.l.bf16 %v2355_v57  ;;  %v2357_v49 = vunpack.i.h.bf16 %v2355_v57 }
 0x2ad   : > { %v2342_v7 = vunpack.i.h.bf16 %v2340_v62  ;;  %v2341_v8 = vunpack.i.l.bf16 %v2340_v62  ;;  %v2296_v50 = vunpack.i.l.bf16 %v2952_v12  ;;  %v2326_v51 = vunpack.i.l.bf16 %v2956_v15 }
 0x2ae   : > { %2093 = vmatprep.subr.bf16.mxu0 %v2092_v63  ;;  %v1214_v9 = vsel %vm1207_vm6, %v2356_v31, %v2351_v56  ;;  %v2100_v58 = vpack.c.bf16 %v2984_v36, %v1215_v34  ;;  %v2256_v57 = vunpack.i.l.bf16 %v2925_v61  ;;  %v2267_v56 = vunpack.i.h.bf16 %v2934_v3 }
 0x2af   : > { %v1137_v27 = vsel %vm1131_vm5, %v2277_v25, %v2341_v8  ;;  %v1140_v33 = vsel %vm1131_vm5, %v2337_v40, %v2342_v7  ;;  %2095 = vmatpush1.bf16.msra.mxu0 %v2094_v60  ;;  %v3012_v35 = vpop.permute.xlu1 %2374  ;;  %v1210_v25 = vsel %vm1207_vm6, %v2227_v17, %v2286_v2  ;;  %v2297_v40 = vunpack.i.h.bf16 %v2952_v12 }
 0x2b0   : > { %v2143_v47 = vpack.c.bf16 %v1140_v33, %v1137_v27  ;;  %v3016_v48 = vpop.permute.xlu0 %2344  ;;  %2097 = vmatprep.subr.bf16.mxu0 %v2096_v30  ;;  %v1286_v17 = vsel %vm1283_vm7, %v2232_v20, %v2237_v38  ;;  %v3042_v36 = vsel %vm1359_vm8, %v2266_v29, %v2241_v23  ;;  %v2146_v0 = vpack.c.bf16 %v1213_v32, %v1210_v25 }
 0x2b1   : > { %v2327_v20 = vunpack.i.h.bf16 %v2956_v15  ;;  %v1216_v38 = vsel %vm1207_vm6, %v2352_v53, %v2357_v49  ;;  %v2102_v42 = vpack.c.bf16 %v1284_v52, %v1214_v9  ;;  %v1287_v63 = vsel %vm1283_vm7, %v2326_v51, %v2291_v41 }
 0x2b2   : > { %2144 = vmatpush1.bf16.msra.mxu1 %v2143_v47  ;;  %v1288_v3 = vsel %vm1283_vm7, %v2291_v41, %v2292_v39  ;;  %v1364_v23 = vsel %vm1359_vm8, %v2296_v50, %v2297_v40  ;;  %v1437_v15 = vsel %vm1435_vm9, %v2246_v18, %v2247_v13  ;;  %v1363_v29 = vsel %vm1359_vm8, %v2267_v56, %v2296_v50 }
 0x2b3   : > { %2099 = vmatpush1.bf16.msra.mxu0 %v2098_v10  ;;  %2145 = vmatprep.subr.bf16.mxu1 %v2486_v28  ;;  %v3036_v59 = vpop.permute.xlu1 %2379  ;;  %v2149_v30 = vpack.c.bf16 %v1286_v17, %v1216_v38  ;;  %v2302_v34 = vunpack.i.h.bf16 %v2954_v14  ;;  %v2301_v10 = vunpack.i.l.bf16 %v2954_v14  ;;  %v2252_v25 = vunpack.i.h.bf16 %v2940_v6 }
 0x2b4   : > { %v2360_v21 = vpop.permute.xlu0 %2359  ;;  %2101 = vmatprep.subr.bf16.mxu0 %v2100_v58  ;;  %v2382_v2 = vunpack.i.h.bf16 %v3036_v59  ;;  %v2381_v7 = vunpack.i.l.bf16 %v3036_v59  ;;  %v2271_v32 = vunpack.i.l.bf16 %v2938_v5  ;;  %v2108_v49 = vpack.c.bf16 %v1364_v23, %v2991_v37 }
 0x2b5   : > { %v2362_v60 = vunpack.i.h.bf16 %v2360_v21  ;;  %v2361_v62 = vunpack.i.l.bf16 %v2360_v21  ;;  %v2251_v50 = vunpack.i.l.bf16 %v2940_v6  ;;  %v2110_v17 = vpack.c.bf16 %v1363_v29, %v3042_v36 }
 0x2b6   : > { %2147 = vmatpush1.bf16.msra.mxu1 %v2146_v0  ;;  %v1367_v14 = vsel %vm1359_vm8, %v2381_v7, %v2382_v2  ;;  %v2307_v59 = vunpack.i.h.bf16 %v2950_v11  ;;  %v2306_v37 = vunpack.i.l.bf16 %v2950_v11  ;;  %v1362_v6 = vsel %vm1359_vm8, %v2242_v22, %v2301_v10 }
 0x2b7   : > { %v1290_v53 = vsel %vm1283_vm7, %v2327_v20, %v2361_v62  ;;  %2103 = vmatpush1.bf16.msra.mxu0 %v2102_v42  ;;  %2148 = vmatprep.subr.bf16.mxu1 %v2486_v28  ;;  %v1291_v1 = vsel %vm1283_vm7, %v2361_v62, %v2362_v60  ;;  %v2385_v8 = vpop.permute.xlu1 %2384  ;;  %v2312_v20 = vunpack.i.h.bf16 %v2958_v16  ;;  %v2311_v36 = vunpack.i.l.bf16 %v2958_v16 }
 0x2b8   : > { %v2106_v31 = vpack.c.bf16 %v1290_v53, %v1287_v63  ;;  %v2365_v27 = vpop.permute.xlu0 %2364  ;;  %v2104_v33 = vpack.c.bf16 %v1291_v1, %v1288_v3  ;;  %v2386_v51 = vunpack.i.l.bf16 %v2385_v8  ;;  %v2387_v21 = vunpack.i.h.bf16 %v2385_v8 }
 0x2b9   : > { %v2367_v41 = vunpack.i.h.bf16 %v2365_v27  ;;  %v2366_v47 = vunpack.i.l.bf16 %v2365_v27  ;;  %v2331_v38 = vunpack.i.l.bf16 %v2962_v19  ;;  %v2112_v42 = vpack.c.bf16 %v1437_v15, %v1367_v14 }
 0x2ba   : > { %2105 = vmatprep.subr.bf16.mxu0 %v2104_v33  ;;  %2150 = vmatpush1.bf16.msra.mxu1 %v2149_v30  ;;  %v1366_v11 = vsel %vm1359_vm8, %v2386_v51, %v2381_v7  ;;  %v1436_v54 = vsel %vm1435_vm9, %v2251_v50, %v2246_v18  ;;  %v2272_v12 = vunpack.i.h.bf16 %v2938_v5  ;;  %v3096_v22 = vsel %vm1511_vm10, %v2271_v32, %v2256_v57 }
 0x2bb   : > { %v1289_v9 = vsel %vm1283_vm7, %v2292_v39, %v2366_v47  ;;  %v1292_v58 = vsel %vm1283_vm7, %v2362_v60, %v2367_v41  ;;  %2107 = vmatpush1.bf16.msra.mxu0 %v2106_v31  ;;  %2151 = vmatprep.subr.bf16.mxu1 %v2486_v28  ;;  %v3072_v52 = vpop.permute.xlu1 %2389  ;;  %v1365_v39 = vsel %vm1359_vm8, %v2297_v40, %v2302_v34  ;;  %v2332_v60 = vunpack.i.h.bf16 %v2962_v19 }
 0x2bc   : > { %v2152_v56 = vpack.c.bf16 %v1292_v58, %v1289_v9  ;;  %v3077_v0 = vpop.permute.xlu0 %2369  ;;  %2109 = vmatprep.subr.bf16.mxu0 %v2108_v49  ;;  %v1513_v40 = vsel %vm1511_vm10, %v2256_v57, %v2257_v26  ;;  %v1438_v5 = vsel %vm1435_vm9, %v2247_v13, %v2252_v25  ;;  %v2155_v18 = vpack.c.bf16 %v1365_v39, %v1362_v6 }
 0x2bd   : > { %v1440_v63 = vsel %vm1435_vm9, %v2306_v37, %v2307_v59  ;;  %v1368_v3 = vsel %vm1359_vm8, %v2382_v2, %v2387_v21  ;;  %v2114_v23 = vpack.c.bf16 %v1436_v54, %v1366_v11  ;;  %v2317_v1 = vunpack.i.h.bf16 %v2968_v24 }
 0x2be   : > { %2153 = vmatpush1.bf16.msra.mxu1 %v2152_v56  ;;  %v2316_v57 = vunpack.i.l.bf16 %v2968_v24  ;;  %v1439_v4 = vsel %vm1435_vm9, %v2331_v38, %v2306_v37  ;;  %v1516_v13 = vsel %vm1511_vm10, %v2311_v36, %v2312_v20  ;;  %v1515_v30 = vsel %vm1511_vm10, %v2272_v12, %v2311_v36 }
 0x2bf   : > { %2111 = vmatpush1.bf16.msra.mxu0 %v2110_v17  ;;  %2154 = vmatprep.subr.bf16.mxu1 %v2486_v28  ;;  %v3099_v16 = vpop.permute.xlu1 %2404  ;;  %v2158_v24 = vpack.c.bf16 %v1438_v5, %v1368_v3  ;;  %v2347_v34 = vunpack.i.h.bf16 %v3016_v48  ;;  %v2346_v10 = vunpack.i.l.bf16 %v3016_v48  ;;  %v1517_v32 = vsel %vm1511_vm10, %v2312_v20, %v2317_v1 }
 0x2c0   : > { %v2395_v62 = vpop.permute.xlu0 %2394  ;;  %2113 = vmatprep.subr.bf16.mxu0 %v2112_v42  ;;  %v2407_v2 = vunpack.i.h.bf16 %v3099_v16  ;;  %v2406_v8 = vunpack.i.l.bf16 %v3099_v16  ;;  %v1514_v25 = vsel %vm1511_vm10, %v2257_v26, %v2316_v57  ;;  %v2120_v49 = vpack.c.bf16 %v1516_v13, %v1513_v40 }
 0x2c1   : > { %v2397_v15 = vunpack.i.h.bf16 %v2395_v62  ;;  %v2396_v53 = vunpack.i.l.bf16 %v2395_v62  ;;  %v2377_v50 = vunpack.i.h.bf16 %v3012_v35  ;;  %v2376_v26 = vunpack.i.l.bf16 %v3012_v35 }
 0x2c2   : > { %2156 = vmatpush1.bf16.msra.mxu1 %v2155_v18  ;;  %v1519_v48 = vsel %vm1511_vm10, %v2406_v8, %v2407_v2  ;;  %v2371_v14 = vunpack.i.l.bf16 %v3077_v0  ;;  %v2391_v17 = vunpack.i.l.bf16 %v3072_v52  ;;  %v2372_v6 = vunpack.i.h.bf16 %v3077_v0 }
 0x2c3   : > { %v1442_v19 = vsel %vm1435_vm9, %v2332_v60, %v2396_v53  ;;  %2115 = vmatpush1.bf16.msra.mxu0 %v2114_v23  ;;  %2157 = vmatprep.subr.bf16.mxu1 %v2486_v28  ;;  %v1443_v7 = vsel %vm1435_vm9, %v2396_v53, %v2397_v15  ;;  %v2410_v29 = vpop.permute.xlu1 %2409  ;;  %v1589_v20 = vsel %vm1587_vm11, %v2346_v10, %v2347_v34 }
 0x2c4   : > { %v2118_v31 = vpack.c.bf16 %v1442_v19, %v1439_v4  ;;  %v2400_v27 = vpop.permute.xlu0 %2399  ;;  %v2116_v33 = vpack.c.bf16 %v1443_v7, %v1440_v63  ;;  %v2411_v51 = vunpack.i.l.bf16 %v2410_v29  ;;  %v2412_v39 = vunpack.i.h.bf16 %v2410_v29 }
 0x2c5   : > { %v2402_v41 = vunpack.i.h.bf16 %v2400_v27  ;;  %v2401_v47 = vunpack.i.l.bf16 %v2400_v27  ;;  %v2124_v36 = vpack.c.bf16 %v1589_v20, %v1519_v48  ;;  %v2164_v11 = vpack.c.bf16 %v1517_v32, %v1514_v25  ;;  %v1690_v48 = vld [vmem:[%s3196_s3] sm:$0xff] }
 0x2c6   : > { %2117 = vmatprep.subr.bf16.mxu0 %v2116_v33  ;;  %2159 = vmatpush1.bf16.msra.mxu1 %v2158_v24  ;;  %v1518_v21 = vsel %vm1511_vm10, %v2411_v51, %v2406_v8  ;;  %v1588_v12 = vsel %vm1587_vm11, %v2371_v14, %v2346_v10  ;;  %v1591_v16 = vsel %vm1587_vm11, %v2391_v17, %v2376_v26 }
 0x2c7   : > { %v1441_v9 = vsel %vm1435_vm9, %v2307_v59, %v2401_v47  ;;  %v1444_v58 = vsel %vm1435_vm9, %v2397_v15, %v2402_v41  ;;  %2119 = vmatpush1.bf16.msra.mxu0 %v2118_v31  ;;  %2160 = vmatprep.subr.bf16.mxu1 %v2486_v28  ;;  %v3133_v61 = vpop.permute.xlu1 %2414  ;;  %v2122_v59 = vpack.c.bf16 %v1515_v30, %v3096_v22  ;;  %v2392_v22 = vunpack.i.h.bf16 %v3072_v52 }
 0x2c8   : > { %v2161_v37 = vpack.c.bf16 %v1444_v58, %v1441_v9  ;;  %v3138_v56 = vpop.permute.xlu0 %2419  ;;  %2121 = vmatprep.subr.bf16.mxu0 %v2120_v49  ;;  %v2417_v35 = vunpack.i.h.bf16 %v3133_v61  ;;  %v2416_v38 = vunpack.i.l.bf16 %v3133_v61  ;;  %v1592_v5 = vsel %vm1587_vm11, %v2376_v26, %v2377_v50 }
 0x2c9   : > { %v2422_v42 = vunpack.i.h.bf16 %v3138_v56  ;;  %v2421_v54 = vunpack.i.l.bf16 %v3138_v56  ;;  %v1520_v18 = vsel %vm1511_vm10, %v2407_v2, %v2412_v39  ;;  %v2126_v60 = vpack.c.bf16 %v1588_v12, %v1518_v21 }
 0x2ca   : > { %2162 = vmatpush1.bf16.msra.mxu1 %v2161_v37  ;;  %v1590_v3 = vsel %vm1587_vm11, %v2347_v34, %v2372_v6  ;;  %v1664_v53 = vsel %vm266_vm1, %v2416_v38, %v2417_v35 }
 0x2cb   : > { %2123 = vmatpush1.bf16.msra.mxu0 %v2122_v59  ;;  %2163 = vmatprep.subr.bf16.mxu1 %v2486_v28  ;;  %v2425_v0 = vpop.permute.xlu1 %2424  ;;  %v1667_v57 = vsel %vm266_vm1, %v2421_v54, %v2422_v42  ;;  %v2167_v4 = vpack.c.bf16 %v1590_v3, %v1520_v18 }
 0x2cc   : > { %v2430_v40 = vpop.permute.xlu0 %2429  ;;  %2125 = vmatprep.subr.bf16.mxu0 %v2124_v36  ;;  %v2427_v23 = vunpack.i.h.bf16 %v2425_v0  ;;  %v2426_v15 = vunpack.i.l.bf16 %v2425_v0  ;;  %v2132_v31 = vpack.c.bf16 %v1667_v57, %v1664_v53 }
 0x2cd   : > { %v2432_v62 = vunpack.i.h.bf16 %v2430_v40  ;;  %v2431_v63 = vunpack.i.l.bf16 %v2430_v40 }
 0x2ce   : > { %2165 = vmatpush1.bf16.msra.mxu1 %v2164_v11  ;;  %v1663_v30 = vsel %vm266_vm1, %v2426_v15, %v2416_v38  ;;  %v1666_v24 = vsel %vm266_vm1, %v2427_v23, %v2421_v54 }
 0x2cf   : > { %v1594_v52 = vsel %vm1587_vm11, %v2392_v22, %v2431_v63  ;;  %2127 = vmatpush1.bf16.msra.mxu0 %v2126_v60  ;;  %2166 = vmatprep.subr.bf16.mxu1 %v2486_v28  ;;  %v1595_v1 = vsel %vm1587_vm11, %v2431_v63, %v2432_v62  ;;  %v1658_v29 = vpop.permute.xlu1 %1657  ;;  %v2134_v41 = vpack.c.bf16 %v1666_v24, %v1663_v30 }
 0x2d0   : > { %v2130_v13 = vpack.c.bf16 %v1594_v52, %v1591_v16  ;;  %v2435_v19 = vpop.permute.xlu0 %2434  ;;  %v2128_v7 = vpack.c.bf16 %v1595_v1, %v1592_v5 }
 0x2d1   : > { %v2437_v2 = vunpack.i.h.bf16 %v2435_v19  ;;  %v2436_v8 = vunpack.i.l.bf16 %v2435_v19 }
 0x2d2   : > { %2129 = vmatprep.subr.bf16.mxu0 %v2128_v7  ;;  %2168 = vmatpush1.bf16.msra.mxu1 %v2167_v4 }
 0x2d3   : > { %v1593_v27 = vsel %vm1587_vm11, %v2377_v50, %v2436_v8  ;;  %v1596_v33 = vsel %vm1587_vm11, %v2432_v62, %v2437_v2  ;;  %2131 = vmatpush1.bf16.msra.mxu0 %v2130_v13  ;;  %2169 = vmatprep.subr.bf16.mxu1 %v2486_v28  ;;  %v1656_v51 = vpop.permute.xlu1 %1655 }
 0x2d4   : > { %v2170_v34 = vpack.c.bf16 %v1596_v33, %v1593_v27  ;;  %v2440_v10 = vpop.permute.xlu0 %2439  ;;  %2133 = vmatprep.subr.bf16.mxu0 %v2132_v31  ;;  %v1669_v61 = vsel %vm266_vm1, %v1656_v51, %v1658_v29 }
 0x2d5   : > { %v2442_v47 = vunpack.i.h.bf16 %v2440_v10  ;;  %v2441_v25 = vunpack.i.l.bf16 %v2440_v10 }
 0x2d6   : > { %2171 = vmatpush1.bf16.msra.mxu1 %v2170_v34 }
 0x2d7   : > { %v1665_v32 = vsel %vm266_vm1, %v2417_v35, %v2441_v25  ;;  %v1668_v49 = vsel %vm266_vm1, %v2422_v42, %v2442_v47  ;;  %2135 = vmatpush1.bf16.msra.mxu0 %v2134_v41  ;;  %2172 = vmatprep.subr.bf16.mxu1 %v2486_v28 }
 0x2d8   : > { %v2173_v50 = vpack.c.bf16 %v1668_v49, %v1665_v32  ;;  %v1660_v9 = vpop.permute.xlu0 %1659 }
 0x2d9   : > { %v1670_v58 = vsel %vm266_vm1, %v1658_v29, %v1660_v9 }
 0x2da   : > { %1835 = vmatprep.subr.mxu0 %v1670_v58  ;;  %2174 = vmatpush1.bf16.msra.mxu1 %v2173_v50 }
 0x2db   : > { %1836 = vmatpush1.msra.mxu0 %v1669_v61  ;;  %1906 = vmatprep.subr.mxu1 %v2484_v55 }
 0x2dc   : > { %v1662_v26 = vpop.permute.xlu0 %1661  ;;  %1848 = vmatmul.mubr.f32.vlgmr.msra.gmra.mrb[8].mxu0 %v1690_v48 }
 0x2dd   : > { %v1671_v28 = vsel %vm266_vm1, %v1660_v9, %v1662_v26 }
 0x2de   : > { %1907 = vmatpush1.msra.mxu1 %v1671_v28 }
 0x2df   : > { %1919 = vmatmul.mubr.f32.vlgmr.msra.gmra.mrb[8].mxu1 %v1690_v48 }
 0x2e4   : > { %v818_v14 = vpop.permute.xlu1 %817 }
 0x2e5   : > { %v918_v17 = vadd.f32 %v2903_v43, %v818_v14  ;;  %v920_v37 = vadd.f32 %v2907_v45, %v818_v14  ;;  %v1007_v56 = vadd.f32 %v2905_v44, %v818_v14  ;;  %v1009_v59 = vadd.f32 %v2909_v46, %v818_v14 }
 0x2e7   : > { %1933 = vrot.lane.b32.xlu0 %v920_v37, %s2489_s16  ;;  %1931 = vrot.lane.b32.xlu1 %v918_v17, %s2489_s16 }
 0x2eb   : > { %1937 = vrot.lane.b32.xlu0 %v1009_v59, %s2489_s16  ;;  %1935 = vrot.lane.b32.xlu1 %v1007_v56, %s2489_s16 }
 0x2ed   : > { %v1777_v55 = vpop.permute.xlu0 %1776 }
 0x359   : > { %v1932_v6 = vpop.permute.xlu1 %1931  ;;  %v1934_v39 = vpop.permute.xlu0 %1933 }
 0x35a   : > { %v1939_v11 = vsel %vm1359_vm8, %v1932_v6, %v1934_v39 }
 0x35d   : > { %v1936_v36 = vpop.permute.xlu1 %1935  ;;  %v1938_v42 = vpop.permute.xlu0 %1937 }
 0x35e   : > { %v1940_v0 = vsel %vm1359_vm8, %v1934_v39, %v1936_v36  ;;  %v1941_v40 = vsel %vm1359_vm8, %v1936_v36, %v1938_v42 }
 0x3af   : > { %v1849_v20 = vpop.f32.mrb[8].mxu0 }
 0x3b0   : > { %v1850_v21 = vadd.f32 %v1849_v20, %v1777_v55  ;;  %v1851_v43 = vpop.f32.mrb[9].mxu0 }
 0x3b1   : > { %v1852_v45 = vadd.f32 %v1851_v43, %v1777_v55 }
 0x3b2   : > { %v1924_v35 = vmax.f32 %v1850_v21, 0.0  ;;  %v1920_v38 = vpop.f32.mrb[8].mxu1 }
 0x3b3   : > { %v1925_v44 = vmax.f32 %v1852_v45, 0.0  ;;  %v1921_v54 = vadd.f32 %v1920_v38, %v1777_v55  ;;  %v1922_v46 = vpop.f32.mrb[9].mxu1 }
 0x3b4   : > { %v1945_v12 = vadd.f32 %v1939_v11, %v1924_v35 }
 0x3b5   : > { %v1946_v22 = vadd.f32 %v1940_v0, %v1925_v44  ;;  %v1926_v16 = vmax.f32 %v1921_v54, 0.0 }
 0x3b6   : > { %v1951_v5 = vmul.f32 0.044715, %v1945_v12  ;;  %v1948_v29 = vmul.f32 0.5, %v1945_v12 }
 0x3b7   : > { %v1952_v18 = vmul.f32 0.044715, %v1946_v22  ;;  %v1947_v60 = vadd.f32 %v1941_v40, %v1926_v16  ;;  %v1949_v24 = vmul.f32 0.5, %v1946_v22 }
 0x3b8   : > { %v1954_v62 = vmul.f32 %v1951_v5, %v1945_v12 }
 0x3b9   : > { %v1955_v63 = vmul.f32 %v1952_v18, %v1946_v22  ;;  %v1953_v3 = vmul.f32 0.044715, %v1947_v60  ;;  %v1950_v10 = vmul.f32 0.5, %v1947_v60 }
 0x3ba   : > { %v1957_v23 = vmul.f32 %v1954_v62, %v1945_v12 }
 0x3bb   : > { %v1958_v15 = vmul.f32 %v1955_v63, %v1946_v22  ;;  %v1956_v53 = vmul.f32 %v1953_v3, %v1947_v60 }
 0x3bc   : > { %v1960_v52 = vadd.f32 %v1957_v23, %v1945_v12 }
 0x3bd   : > { %v1961_v1 = vadd.f32 %v1958_v15, %v1946_v22  ;;  %v1959_v57 = vmul.f32 %v1956_v53, %v1947_v60 }
 0x3be   : > { %v1963_v4 = vmul.f32 0.7978846, %v1960_v52 }
 0x3bf   : > { %v1964_v13 = vmul.f32 0.7978846, %v1961_v1  ;;  %v1962_v19 = vadd.f32 %v1959_v57, %v1947_v60 }
 0x3c0   : > { %2454 = vtanh.f32 %v1963_v4 }
 0x3c1   : > { %2456 = vtanh.f32 %v1964_v13  ;;  %v1965_v7 = vmul.f32 0.7978846, %v1962_v19 }
 0x3c3   : > { %2458 = vtanh.f32 %v1965_v7 }
 0x3ca   : > { %v2455_v2 = vpop.eup %2454 }
 0x3cb   : > { %v2457_v8 = vpop.eup %2456  ;;  %v1969_v30 = vadd.f32 1.0, %v2455_v2 }
 0x3cc   : > { %v1970_v31 = vadd.f32 1.0, %v2457_v8 }
 0x3cd   : > { %v2459_v27 = vpop.eup %2458  ;;  %v1972_v33 = vmul.f32 %v1969_v30, %v1948_v29 }
 0x3ce   : > { %v1973_v34 = vmul.f32 %v1970_v31, %v1949_v24  ;;  %v1971_v41 = vadd.f32 1.0, %v2459_v27 }
 0x3cf   : > { %1975 = vst [vmem:[%s251_s10] sm:$0xff] %v1972_v33 }
 0x3d0   : > { %1976 = vst [vmem:[%s251_s10 + $0x8] sm:$0xff] %v1973_v34  ;;  %v1974_v47 = vmul.f32 %v1971_v41, %v1950_v10 }
 0x3d2   : > { %1977 = vst [vmem:[%s251_s10 + $0x10] sm:$0xff] %v1974_v47 }
 0x3d3 PF: > { %s16_s21 = sadd.s32 1, %s2466_s21  }
 0x3d4   : > { %p13_p4 = scmp.ge.s32.totalorder %s16_s21, 4  }
 0x3d6   :  { %15 = sbr.rel (!%p13_p4) target bundleno = 1 (0x1), region = 74 }

</bundles_post_ra>
